<compile_context>
chip_gen: v7x
topology: tpu7x:2x2x1
jax: 0.10.0
libtpu: 0.0.40
codegen_flags: <defaults>
</compile_context>

<pallas_src>
import functools

import jax
import jax.numpy as jnp
import numpy as np
from jax import lax
from jax.experimental import pallas as pl
from jax.experimental.pallas import tpu as pltpu


# ----------------------------------------------------------------------------
# Fused bottleneck kernel: one grid step = `blk` independent (n, t) slices.
# ----------------------------------------------------------------------------
def _bottleneck_kernel(x_ref, w1_ref, w2_ref, w3_ref, b1_ref, b2_ref, b3_ref,
                       o_ref, pad_ref, col_ref, *, blk, H, W, planes, cin):
    """Shapes:
      x_ref  : (blk, H, W, cin)            f32   (also the identity residual)
      w1_ref : (cin, planes)               bf16  (bn1 scale folded in)
      w2_ref : (9*planes, planes)          bf16  (im2col layout, bn2 scale folded)
      w3_ref : (planes, cin)               bf16  (bn3 scale folded in)
      b*_ref : (1, C)                      f32   folded BatchNorm shifts
      o_ref  : (blk, H, W, cin)            f32
      pad_ref: VMEM (blk, H+2, W+2, planes)    bf16  padded h1
      col_ref: VMEM (blk*H*W, 9*planes)        bf16  im2col patch buffer
    """
    M = blk * H * W
    x_flat = x_ref[...].reshape(M, cin)                      # residual too

    # ---- conv1 (1x1x1) + bn1 + relu  (bf16 MXU operands, f32 accumulate) ---
    h1 = jnp.dot(x_flat.astype(jnp.bfloat16), w1_ref[...],
                 preferred_element_type=jnp.float32)          # (M, planes)
    h1 = jnp.maximum(h1 + b1_ref[...], 0.0)
    # TODO(synk): when planes < 128, repack this bias+ReLU (and h2's) into a
    #             lane-dense (M/4, 128) view with a 4x-tiled bias.

    # ---- conv2 (1,3,3), stride 1, pad (1,1) + bn2 + relu -------------------
    # Zero only the 1-element halo (the interior is fully overwritten below).
    zrow = jnp.zeros((blk, 1, W + 2, planes), jnp.bfloat16)
    zcol = jnp.zeros((blk, H + 2, 1, planes), jnp.bfloat16)
    pad_ref[:, 0:1, :, :] = zrow
    pad_ref[:, H + 1:H + 2, :, :] = zrow
    pad_ref[:, :, 0:1, :] = zcol
    pad_ref[:, :, W + 1:W + 2, :] = zcol
    # Cast h1 to bf16 ONCE and store it into the padded interior.
    pad_ref[:, 1:H + 1, 1:W + 1, :] = (
        h1.astype(jnp.bfloat16).reshape(blk, H, W, planes))

    # im2col: pack the 9 taps once, then ONE K = 9*planes matmul on the MXU.
    for dy in range(3):
        for dx in range(3):
            t = dy * 3 + dx
            col_ref[:, t * planes:(t + 1) * planes] = (
                pad_ref[:, dy:dy + H, dx:dx + W, :].reshape(M, planes))
    h2 = jnp.dot(col_ref[...], w2_ref[...],
                 preferred_element_type=jnp.float32)          # (M, planes)
    h2 = jnp.maximum(h2 + b2_ref[...], 0.0)

    # ---- conv3 (1x1x1) + bn3 + residual (resident x block) + relu ----------
    z = jnp.dot(h2.astype(jnp.bfloat16), w3_ref[...],
                preferred_element_type=jnp.float32)           # (M, cin)
    z = z + b3_ref[...] + x_flat
    o_ref[...] = jnp.maximum(z, 0.0).reshape(blk, H, W, cin).astype(o_ref.dtype)


# ----------------------------------------------------------------------------
# Generation-aware VMEM budget and block-size selection.
# ----------------------------------------------------------------------------
def _vmem_budget_bytes():
    """Returns (block-selection budget, vmem_limit_bytes), generation-aware."""
    cap = None
    try:
        cap = int(getattr(pltpu.get_tpu_info(), "vmem_capacity_bytes", 0)) or None
    except Exception:
        cap = None
    if cap is None:
        cap = 64 * 1024 * 1024                      # conservative: v7x = 64 MiB / TC
    limit = min(cap * 3 // 4, 96 * 1024 * 1024)     # ~48 MiB on v7x, 96 MiB on v5e/v6e
    budget = limit * 3 // 4                         # headroom for compiler temporaries
    return budget, limit


def _pick_block_slices(nt, H, W, cin, planes, budget_bytes):
    """Largest divisor of nt whose per-step footprint fits the VMEM budget while
    keeping >= min(nt, 8) grid steps (>= ~4 steps per v7x TensorCore so the
    software pipeline warms up)."""
    min_grid = min(nt, 8)

    def est(b):
        m = b * H * W
        io = 2 * 2 * m * cin * 4                        # x + out, double-buffered f32
        pad = b * (H + 2) * (W + 2) * planes * 2        # bf16 padded scratch
        col = m * 9 * planes * 2                        # bf16 im2col scratch
        tmp = m * (2 * planes * 4 + cin * 6 + planes * 2)  # h1/h2/z + bf16 casts (rough)
        wts = 4 * (cin * planes + 9 * planes * planes + planes * cin) * 2
        return io + pad + col + tmp + wts

    best = 1
    for b in range(1, nt + 1):
        if nt % b:
            continue
        if nt // b < min_grid:
            continue
        if est(b) <= budget_bytes:
            best = b
    return best


# ----------------------------------------------------------------------------
# Pallas-call wrapper (channels-last, grid over blocks of (n, t) slices)
# ----------------------------------------------------------------------------
def fused_bottleneck(xt, params):
    """xt: (N*T, H, W, Cin) f32 channels-last. Returns (N*T, H, W, Cin) f32."""
    nt, H, W, cin = xt.shape
    planes = params["w1"].shape[1]
    budget, vmem_limit = _vmem_budget_bytes()
    blk = _pick_block_slices(nt, H, W, cin, planes, budget)
    grid = (nt // blk,)

    kernel = functools.partial(_bottleneck_kernel, blk=blk, H=H, W=W,
                               planes=planes, cin=cin)
    const2 = lambda i: (0, 0)

    # TODO(synk): offer a bf16 x/output path (halves the two full-tensor HBM
    #             passes; most valuable on v5e/v6e).
    # TODO(synk): on v5e, if input DMA is still exposed after larger blocks,
    #             add pipeline_mode=pl.Buffered(3) on the x spec (not on v7x).
    return pl.pallas_call(
        kernel,
        out_shape=jax.ShapeDtypeStruct((nt, H, W, cin), jnp.float32),
        grid=grid,
        in_specs=[
            pl.BlockSpec((blk, H, W, cin), lambda i: (i, 0, 0, 0)),   # x
            pl.BlockSpec((cin, planes), const2),                      # w1 (bf16)
            pl.BlockSpec((9 * planes, planes), const2),               # w2 im2col (bf16)
            pl.BlockSpec((planes, cin), const2),                      # w3 (bf16)
            pl.BlockSpec((1, planes), const2),                        # b1
            pl.BlockSpec((1, planes), const2),                        # b2
            pl.BlockSpec((1, cin), const2),                           # b3
        ],
        out_specs=pl.BlockSpec((blk, H, W, cin), lambda i: (i, 0, 0, 0)),
        scratch_shapes=[
            pltpu.VMEM((blk, H + 2, W + 2, planes), jnp.bfloat16),    # padded h1
            pltpu.VMEM((blk * H * W, 9 * planes), jnp.bfloat16),      # im2col buffer
        ],
        compiler_params=pltpu.CompilerParams(
            dimension_semantics=("parallel",),
            vmem_limit_bytes=vmem_limit),
    )(xt, params["w1"], params["w2"], params["w3"],
      params["b1"], params["b2"], params["b3"])


# ----------------------------------------------------------------------------
# Full BottleneckC2D forward (stride=1, downsample=None -> inplanes == 4*planes)
# ----------------------------------------------------------------------------
def bottleneck_c2d(x, params):
    """x: (N, C, T, H, W) float32 (PyTorch NCDHW). Returns same layout."""
    N, C, T, H, W = x.shape
    # TODO(synk): channels-last end-to-end across blocks would remove these two
    #             full-tensor HBM relayout passes (XLA glue, not a kernel).
    xt = jnp.transpose(x, (0, 2, 3, 4, 1)).reshape(N * T, H, W, C)
    out = fused_bottleneck(xt, params)                       # (N*T, H, W, C)
    return jnp.transpose(out.reshape(N, T, H, W, C), (0, 4, 1, 2, 3))


# ----------------------------------------------------------------------------
# Parameter preparation: fold eval-mode BatchNorm into conv weights (f32) and
# cast the matmul operands to bf16 once.
# ----------------------------------------------------------------------------
def fold_bn(gamma, beta, mean, var, eps=1e-5):
    s = gamma / jnp.sqrt(var + eps)
    b = beta - mean * s
    return s, b


def prepare_params(tw1, tw2, tw3, bn1, bn2, bn3):
    """tw*: torch-layout conv weights (O, I, kT, kH, kW); bn* = (gamma, beta, mean, var)."""
    s1, b1 = fold_bn(*bn1)
    s2, b2 = fold_bn(*bn2)
    s3, b3 = fold_bn(*bn3)
    planes = tw2.shape[1]
    # conv1: (planes, cin, 1,1,1) -> (cin, planes), bn1 scale folded per output col
    w1 = jnp.transpose(tw1[:, :, 0, 0, 0], (1, 0)) * s1[None, :]
    # conv2: (planes, planes, 1,3,3) -> (3,3,in,out) -> (9*in, out), bn2 scale folded
    w2 = jnp.transpose(tw2[:, :, 0, :, :], (2, 3, 1, 0)) * s2[None, None, None, :]
    w2 = w2.reshape(9 * planes, tw2.shape[0])
    # conv3: (4*planes, planes, 1,1,1) -> (planes, 4*planes), bn3 scale folded
    w3 = jnp.transpose(tw3[:, :, 0, 0, 0], (1, 0)) * s3[None, :]
    return {
        "w1": w1.astype(jnp.bfloat16),
        "w2": w2.astype(jnp.bfloat16),
        "w3": w3.astype(jnp.bfloat16),
        "b1": b1.reshape(1, -1), "b2": b2.reshape(1, -1), "b3": b3.reshape(1, -1),
    }


# ----------------------------------------------------------------------------
# Pure-JAX (lax.conv, f32) reference for verification
# ----------------------------------------------------------------------------
def bottleneck_c2d_ref(x, tw1, tw2, tw3, bns):
    dn = ("NCDHW", "OIDHW", "NCDHW")

    def bn(z, s, b):
        return z * s.reshape(1, -1, 1, 1, 1) + b.reshape(1, -1, 1, 1, 1)

    out = lax.conv_general_dilated(x, tw1, (1, 1, 1), [(0, 0)] * 3,
                                   dimension_numbers=dn)
    out = jax.nn.relu(bn(out, bns["s1"], bns["b1"]))
    out = lax.conv_general_dilated(out, tw2, (1, 1, 1),
                                   [(0, 0), (1, 1), (1, 1)], dimension_numbers=dn)
    out = jax.nn.relu(bn(out, bns["s2"], bns["b2"]))
    out = lax.conv_general_dilated(out, tw3, (1, 1, 1), [(0, 0)] * 3,
                                   dimension_numbers=dn)
    out = bn(out, bns["s3"], bns["b3"]) + x
    return jax.nn.relu(out)


if __name__ == "__main__":
    # Small, module-consistent shapes: inplanes = planes * expansion so the
    # identity residual path is valid (stride=1, downsample=None).  planes=32
    # gives Cin = Cout = 128 -> lane-dense residual / output channels.
    N, T, H, W = 2, 4, 8, 8
    planes = 32
    inplanes = planes * 4  # 128

    key = jax.random.PRNGKey(0)
    keys = jax.random.split(key, 16)

    x = jax.random.normal(keys[0], (N, inplanes, T, H, W), jnp.float32)

    # Torch-shaped conv weights (O, I, kT, kH, kW), deterministic init.
    tw1 = 0.1 * jax.random.normal(keys[1], (planes, inplanes, 1, 1, 1), jnp.float32)
    tw2 = 0.1 * jax.random.normal(keys[2], (planes, planes, 1, 3, 3), jnp.float32)
    tw3 = 0.1 * jax.random.normal(keys[3], (planes * 4, planes, 1, 1, 1), jnp.float32)

    # Deterministic synthetic BatchNorm parameters (eval-mode running stats).
    def make_bn(kg, kb, km, kv, c):
        gamma = 1.0 + 0.1 * jax.random.normal(kg, (c,), jnp.float32)
        beta = 0.1 * jax.random.normal(kb, (c,), jnp.float32)
        mean = 0.1 * jax.random.normal(km, (c,), jnp.float32)
        var = jnp.abs(jax.random.normal(kv, (c,), jnp.float32)) + 0.5
        return gamma, beta, mean, var

    bn1 = make_bn(keys[4], keys[5], keys[6], keys[7], planes)
    bn2 = make_bn(keys[8], keys[9], keys[10], keys[11], planes)
    bn3 = make_bn(keys[12], keys[13], keys[14], keys[15], planes * 4)

    params = prepare_params(tw1, tw2, tw3, bn1, bn2, bn3)

    out = jax.jit(bottleneck_c2d)(x, params)
    out = jax.block_until_ready(out)

    s1, b1 = fold_bn(*bn1)
    s2, b2 = fold_bn(*bn2)
    s3, b3 = fold_bn(*bn3)
    ref = bottleneck_c2d_ref(x, tw1, tw2, tw3,
                             {"s1": s1, "b1": b1, "s2": s2, "b2": b2,
                              "s3": s3, "b3": b3})
    ref = jax.block_until_ready(ref)

    # bf16 MXU operands + bf16 h1 staging in the kernel vs. pure-f32 reference
    # -> loosened tolerance.
    np.testing.assert_allclose(np.asarray(out), np.asarray(ref),
                               rtol=3e-2, atol=6e-2)
    print("KERNEL_OK")
</pallas_src>

<mosaic_0001>
module attributes {stable_mosaic.version = 11 : i64} {
  func.func @_bottleneck_kernel(%arg0: i32, %arg1: memref<1x8x8x128xf32, #tpu.memory_space<vmem>>, %arg2: memref<128x32xbf16, #tpu.memory_space<vmem>>, %arg3: memref<288x32xbf16, #tpu.memory_space<vmem>>, %arg4: memref<32x128xbf16, #tpu.memory_space<vmem>>, %arg5: memref<1x32xf32, #tpu.memory_space<vmem>>, %arg6: memref<1x32xf32, #tpu.memory_space<vmem>>, %arg7: memref<1x128xf32, #tpu.memory_space<vmem>>, %arg8: memref<1x8x8x128xf32, #tpu.memory_space<vmem>>, %arg9: memref<1x10x10x32xbf16, #tpu.memory_space<vmem>>, %arg10: memref<64x288xbf16, #tpu.memory_space<vmem>>) attributes {dimension_semantics = [#tpu.dimension_semantics<parallel>], iteration_bounds = array<i64: 8>, scalar_prefetch = 0 : i64, scratch_operands = 2 : i64, tpu.core_type = #tpu.core_type<tc>, window_params = [{transform_indices = @transform_0, window_bounds = array<i64: 1, 8, 8, 128>}, {pipeline_mode = #tpu.pipeline_mode<synchronous>, transform_indices = @transform_1, window_bounds = array<i64: 128, 32>}, {pipeline_mode = #tpu.pipeline_mode<synchronous>, transform_indices = @transform_2, window_bounds = array<i64: 288, 32>}, {pipeline_mode = #tpu.pipeline_mode<synchronous>, transform_indices = @transform_3, window_bounds = array<i64: 32, 128>}, {pipeline_mode = #tpu.pipeline_mode<synchronous>, transform_indices = @transform_4, window_bounds = array<i64: 1, 32>}, {pipeline_mode = #tpu.pipeline_mode<synchronous>, transform_indices = @transform_5, window_bounds = array<i64: 1, 32>}, {pipeline_mode = #tpu.pipeline_mode<synchronous>, transform_indices = @transform_6, window_bounds = array<i64: 1, 128>}, {transform_indices = @transform_7, window_bounds = array<i64: 1, 8, 8, 128>}]} {
    %c0 = arith.constant 0 : index
    %c0_0 = arith.constant 0 : index
    %c0_1 = arith.constant 0 : index
    %c0_2 = arith.constant 0 : index
    %0 = vector.load %arg1[%c0, %c0_0, %c0_1, %c0_2] : memref<1x8x8x128xf32, #tpu.memory_space<vmem>>, vector<1x8x8x128xf32>
    %1 = vector.shape_cast %0 : vector<1x8x8x128xf32> to vector<64x128xf32>
    %2 = arith.truncf %1 : vector<64x128xf32> to vector<64x128xbf16>
    %c0_3 = arith.constant 0 : index
    %c0_4 = arith.constant 0 : index
    %3 = vector.load %arg2[%c0_3, %c0_4] : memref<128x32xbf16, #tpu.memory_space<vmem>>, vector<128x32xbf16>
    %cst = arith.constant dense<0.000000e+00> : vector<64x32xf32>
    %4 = tpu.matmul %2, %3, %cst {dimension_numbers = #tpu.dot_dimension_numbers<[1], [0], [0], [1], [0, 0, 1, 1], [], []>} : vector<64x128xbf16>, vector<128x32xbf16>, vector<64x32xf32> -> vector<64x32xf32>
    %c0_5 = arith.constant 0 : index
    %c0_6 = arith.constant 0 : index
    %5 = vector.load %arg5[%c0_5, %c0_6] : memref<1x32xf32, #tpu.memory_space<vmem>>, vector<1x32xf32>
    %6 = vector.broadcast %5 : vector<1x32xf32> to vector<64x32xf32>
    %7 = arith.addf %4, %6 : vector<64x32xf32>
    %cst_7 = arith.constant 0.000000e+00 : f32
    %8 = vector.broadcast %cst_7 : f32 to vector<64x32xf32>
    %9 = arith.maximumf %7, %8 : vector<64x32xf32>
    %cst_8 = arith.constant 0.000000e+00 : bf16
    %10 = vector.broadcast %cst_8 : bf16 to vector<1x1x10x32xbf16>
    %cst_9 = arith.constant 0.000000e+00 : bf16
    %11 = vector.broadcast %cst_9 : bf16 to vector<1x10x1x32xbf16>
    %c0_10 = arith.constant 0 : index
    %c0_11 = arith.constant 0 : index
    %c0_12 = arith.constant 0 : index
    %c0_13 = arith.constant 0 : index
    %12 = vector.load %arg9[%c0_10, %c0_11, %c0_12, %c0_13] : memref<1x10x10x32xbf16, #tpu.memory_space<vmem>>, vector<1x1x10x32xbf16>
    tpu.vector_store %arg9[%c0_10, %c0_11, %c0_12, %c0_13], %10 {strides = array<i32>} : memref<1x10x10x32xbf16, #tpu.memory_space<vmem>>, vector<1x1x10x32xbf16>,
    %c0_14 = arith.constant 0 : index
    %c9 = arith.constant 9 : index
    %c0_15 = arith.constant 0 : index
    %c0_16 = arith.constant 0 : index
    %13 = vector.load %arg9[%c0_14, %c9, %c0_15, %c0_16] : memref<1x10x10x32xbf16, #tpu.memory_space<vmem>>, vector<1x1x10x32xbf16>
    tpu.vector_store %arg9[%c0_14, %c9, %c0_15, %c0_16], %10 {strides = array<i32>} : memref<1x10x10x32xbf16, #tpu.memory_space<vmem>>, vector<1x1x10x32xbf16>,
    %c0_17 = arith.constant 0 : index
    %c0_18 = arith.constant 0 : index
    %c0_19 = arith.constant 0 : index
    %c0_20 = arith.constant 0 : index
    %14 = vector.load %arg9[%c0_17, %c0_18, %c0_19, %c0_20] : memref<1x10x10x32xbf16, #tpu.memory_space<vmem>>, vector<1x10x1x32xbf16>
    tpu.vector_store %arg9[%c0_17, %c0_18, %c0_19, %c0_20], %11 {strides = array<i32>} : memref<1x10x10x32xbf16, #tpu.memory_space<vmem>>, vector<1x10x1x32xbf16>,
    %c0_21 = arith.constant 0 : index
    %c0_22 = arith.constant 0 : index
    %c9_23 = arith.constant 9 : index
    %c0_24 = arith.constant 0 : index
    %15 = vector.load %arg9[%c0_21, %c0_22, %c9_23, %c0_24] : memref<1x10x10x32xbf16, #tpu.memory_space<vmem>>, vector<1x10x1x32xbf16>
    tpu.vector_store %arg9[%c0_21, %c0_22, %c9_23, %c0_24], %11 {strides = array<i32>} : memref<1x10x10x32xbf16, #tpu.memory_space<vmem>>, vector<1x10x1x32xbf16>,
    %16 = arith.truncf %9 : vector<64x32xf32> to vector<64x32xbf16>
    %17 = vector.shape_cast %16 : vector<64x32xbf16> to vector<1x8x8x32xbf16>
    %c0_25 = arith.constant 0 : index
    %c1 = arith.constant 1 : index
    %c1_26 = arith.constant 1 : index
    %c0_27 = arith.constant 0 : index
    %18 = vector.load %arg9[%c0_25, %c1, %c1_26, %c0_27] : memref<1x10x10x32xbf16, #tpu.memory_space<vmem>>, vector<1x8x8x32xbf16>
    tpu.vector_store %arg9[%c0_25, %c1, %c1_26, %c0_27], %17 {strides = array<i32>} : memref<1x10x10x32xbf16, #tpu.memory_space<vmem>>, vector<1x8x8x32xbf16>,
    %c0_28 = arith.constant 0 : index
    %c0_29 = arith.constant 0 : index
    %c0_30 = arith.constant 0 : index
    %c0_31 = arith.constant 0 : index
    %19 = vector.load %arg9[%c0_28, %c0_29, %c0_30, %c0_31] : memref<1x10x10x32xbf16, #tpu.memory_space<vmem>>, vector<1x8x8x32xbf16>
    %20 = vector.shape_cast %19 : vector<1x8x8x32xbf16> to vector<64x32xbf16>
    %c0_32 = arith.constant 0 : index
    %c0_33 = arith.constant 0 : index
    %21 = vector.load %arg10[%c0_32, %c0_33] : memref<64x288xbf16, #tpu.memory_space<vmem>>, vector<64x32xbf16>
    tpu.vector_store %arg10[%c0_32, %c0_33], %20 {strides = array<i32>} : memref<64x288xbf16, #tpu.memory_space<vmem>>, vector<64x32xbf16>,
    %c0_34 = arith.constant 0 : index
    %c0_35 = arith.constant 0 : index
    %c1_36 = arith.constant 1 : index
    %c0_37 = arith.constant 0 : index
    %22 = vector.load %arg9[%c0_34, %c0_35, %c1_36, %c0_37] : memref<1x10x10x32xbf16, #tpu.memory_space<vmem>>, vector<1x8x8x32xbf16>
    %23 = vector.shape_cast %22 : vector<1x8x8x32xbf16> to vector<64x32xbf16>
    %c0_38 = arith.constant 0 : index
    %c32 = arith.constant 32 : index
    %24 = vector.load %arg10[%c0_38, %c32] : memref<64x288xbf16, #tpu.memory_space<vmem>>, vector<64x32xbf16>
    tpu.vector_store %arg10[%c0_38, %c32], %23 {strides = array<i32>} : memref<64x288xbf16, #tpu.memory_space<vmem>>, vector<64x32xbf16>,
    %c0_39 = arith.constant 0 : index
    %c0_40 = arith.constant 0 : index
    %c2 = arith.constant 2 : index
    %c0_41 = arith.constant 0 : index
    %25 = vector.load %arg9[%c0_39, %c0_40, %c2, %c0_41] : memref<1x10x10x32xbf16, #tpu.memory_space<vmem>>, vector<1x8x8x32xbf16>
    %26 = vector.shape_cast %25 : vector<1x8x8x32xbf16> to vector<64x32xbf16>
    %c0_42 = arith.constant 0 : index
    %c64 = arith.constant 64 : index
    %27 = vector.load %arg10[%c0_42, %c64] : memref<64x288xbf16, #tpu.memory_space<vmem>>, vector<64x32xbf16>
    tpu.vector_store %arg10[%c0_42, %c64], %26 {strides = array<i32>} : memref<64x288xbf16, #tpu.memory_space<vmem>>, vector<64x32xbf16>,
    %c0_43 = arith.constant 0 : index
    %c1_44 = arith.constant 1 : index
    %c0_45 = arith.constant 0 : index
    %c0_46 = arith.constant 0 : index
    %28 = vector.load %arg9[%c0_43, %c1_44, %c0_45, %c0_46] : memref<1x10x10x32xbf16, #tpu.memory_space<vmem>>, vector<1x8x8x32xbf16>
    %29 = vector.shape_cast %28 : vector<1x8x8x32xbf16> to vector<64x32xbf16>
    %c0_47 = arith.constant 0 : index
    %c96 = arith.constant 96 : index
    %30 = vector.load %arg10[%c0_47, %c96] : memref<64x288xbf16, #tpu.memory_space<vmem>>, vector<64x32xbf16>
    tpu.vector_store %arg10[%c0_47, %c96], %29 {strides = array<i32>} : memref<64x288xbf16, #tpu.memory_space<vmem>>, vector<64x32xbf16>,
    %c0_48 = arith.constant 0 : index
    %c1_49 = arith.constant 1 : index
    %c1_50 = arith.constant 1 : index
    %c0_51 = arith.constant 0 : index
    %31 = vector.load %arg9[%c0_48, %c1_49, %c1_50, %c0_51] : memref<1x10x10x32xbf16, #tpu.memory_space<vmem>>, vector<1x8x8x32xbf16>
    %32 = vector.shape_cast %31 : vector<1x8x8x32xbf16> to vector<64x32xbf16>
    %c0_52 = arith.constant 0 : index
    %c128 = arith.constant 128 : index
    %33 = vector.load %arg10[%c0_52, %c128] : memref<64x288xbf16, #tpu.memory_space<vmem>>, vector<64x32xbf16>
    tpu.vector_store %arg10[%c0_52, %c128], %32 {strides = array<i32>} : memref<64x288xbf16, #tpu.memory_space<vmem>>, vector<64x32xbf16>,
    %c0_53 = arith.constant 0 : index
    %c1_54 = arith.constant 1 : index
    %c2_55 = arith.constant 2 : index
    %c0_56 = arith.constant 0 : index
    %34 = vector.load %arg9[%c0_53, %c1_54, %c2_55, %c0_56] : memref<1x10x10x32xbf16, #tpu.memory_space<vmem>>, vector<1x8x8x32xbf16>
    %35 = vector.shape_cast %34 : vector<1x8x8x32xbf16> to vector<64x32xbf16>
    %c0_57 = arith.constant 0 : index
    %c160 = arith.constant 160 : index
    %36 = vector.load %arg10[%c0_57, %c160] : memref<64x288xbf16, #tpu.memory_space<vmem>>, vector<64x32xbf16>
    tpu.vector_store %arg10[%c0_57, %c160], %35 {strides = array<i32>} : memref<64x288xbf16, #tpu.memory_space<vmem>>, vector<64x32xbf16>,
    %c0_58 = arith.constant 0 : index
    %c2_59 = arith.constant 2 : index
    %c0_60 = arith.constant 0 : index
    %c0_61 = arith.constant 0 : index
    %37 = vector.load %arg9[%c0_58, %c2_59, %c0_60, %c0_61] : memref<1x10x10x32xbf16, #tpu.memory_space<vmem>>, vector<1x8x8x32xbf16>
    %38 = vector.shape_cast %37 : vector<1x8x8x32xbf16> to vector<64x32xbf16>
    %c0_62 = arith.constant 0 : index
    %c192 = arith.constant 192 : index
    %39 = vector.load %arg10[%c0_62, %c192] : memref<64x288xbf16, #tpu.memory_space<vmem>>, vector<64x32xbf16>
    tpu.vector_store %arg10[%c0_62, %c192], %38 {strides = array<i32>} : memref<64x288xbf16, #tpu.memory_space<vmem>>, vector<64x32xbf16>,
    %c0_63 = arith.constant 0 : index
    %c2_64 = arith.constant 2 : index
    %c1_65 = arith.constant 1 : index
    %c0_66 = arith.constant 0 : index
    %40 = vector.load %arg9[%c0_63, %c2_64, %c1_65, %c0_66] : memref<1x10x10x32xbf16, #tpu.memory_space<vmem>>, vector<1x8x8x32xbf16>
    %41 = vector.shape_cast %40 : vector<1x8x8x32xbf16> to vector<64x32xbf16>
    %c0_67 = arith.constant 0 : index
    %c224 = arith.constant 224 : index
    %42 = vector.load %arg10[%c0_67, %c224] : memref<64x288xbf16, #tpu.memory_space<vmem>>, vector<64x32xbf16>
    tpu.vector_store %arg10[%c0_67, %c224], %41 {strides = array<i32>} : memref<64x288xbf16, #tpu.memory_space<vmem>>, vector<64x32xbf16>,
    %c0_68 = arith.constant 0 : index
    %c2_69 = arith.constant 2 : index
    %c2_70 = arith.constant 2 : index
    %c0_71 = arith.constant 0 : index
    %43 = vector.load %arg9[%c0_68, %c2_69, %c2_70, %c0_71] : memref<1x10x10x32xbf16, #tpu.memory_space<vmem>>, vector<1x8x8x32xbf16>
    %44 = vector.shape_cast %43 : vector<1x8x8x32xbf16> to vector<64x32xbf16>
    %c0_72 = arith.constant 0 : index
    %c256 = arith.constant 256 : index
    %45 = vector.load %arg10[%c0_72, %c256] : memref<64x288xbf16, #tpu.memory_space<vmem>>, vector<64x32xbf16>
    tpu.vector_store %arg10[%c0_72, %c256], %44 {strides = array<i32>} : memref<64x288xbf16, #tpu.memory_space<vmem>>, vector<64x32xbf16>,
    %c0_73 = arith.constant 0 : index
    %c0_74 = arith.constant 0 : index
    %46 = vector.load %arg10[%c0_73, %c0_74] : memref<64x288xbf16, #tpu.memory_space<vmem>>, vector<64x288xbf16>
    %c0_75 = arith.constant 0 : index
    %c0_76 = arith.constant 0 : index
    %47 = vector.load %arg3[%c0_75, %c0_76] : memref<288x32xbf16, #tpu.memory_space<vmem>>, vector<288x32xbf16>
    %cst_77 = arith.constant dense<0.000000e+00> : vector<64x32xf32>
    %48 = tpu.matmul %46, %47, %cst_77 {dimension_numbers = #tpu.dot_dimension_numbers<[1], [0], [0], [1], [0, 0, 1, 1], [], []>} : vector<64x288xbf16>, vector<288x32xbf16>, vector<64x32xf32> -> vector<64x32xf32>
    %c0_78 = arith.constant 0 : index
    %c0_79 = arith.constant 0 : index
    %49 = vector.load %arg6[%c0_78, %c0_79] : memref<1x32xf32, #tpu.memory_space<vmem>>, vector<1x32xf32>
    %50 = vector.broadcast %49 : vector<1x32xf32> to vector<64x32xf32>
    %51 = arith.addf %48, %50 : vector<64x32xf32>
    %cst_80 = arith.constant 0.000000e+00 : f32
    %52 = vector.broadcast %cst_80 : f32 to vector<64x32xf32>
    %53 = arith.maximumf %51, %52 : vector<64x32xf32>
    %54 = arith.truncf %53 : vector<64x32xf32> to vector<64x32xbf16>
    %c0_81 = arith.constant 0 : index
    %c0_82 = arith.constant 0 : index
    %55 = vector.load %arg4[%c0_81, %c0_82] : memref<32x128xbf16, #tpu.memory_space<vmem>>, vector<32x128xbf16>
    %cst_83 = arith.constant dense<0.000000e+00> : vector<64x128xf32>
    %56 = tpu.matmul %54, %55, %cst_83 {dimension_numbers = #tpu.dot_dimension_numbers<[1], [0], [0], [1], [0, 0, 1, 1], [], []>} : vector<64x32xbf16>, vector<32x128xbf16>, vector<64x128xf32> -> vector<64x128xf32>
    %c0_84 = arith.constant 0 : index
    %c0_85 = arith.constant 0 : index
    %57 = vector.load %arg7[%c0_84, %c0_85] : memref<1x128xf32, #tpu.memory_space<vmem>>, vector<1x128xf32>
    %58 = vector.broadcast %57 : vector<1x128xf32> to vector<64x128xf32>
    %59 = arith.addf %56, %58 : vector<64x128xf32>
    %60 = arith.addf %59, %1 : vector<64x128xf32>
    %cst_86 = arith.constant 0.000000e+00 : f32
    %61 = vector.broadcast %cst_86 : f32 to vector<64x128xf32>
    %62 = arith.maximumf %60, %61 : vector<64x128xf32>
    %63 = vector.shape_cast %62 : vector<64x128xf32> to vector<1x8x8x128xf32>
    %c0_87 = arith.constant 0 : index
    %c0_88 = arith.constant 0 : index
    %c0_89 = arith.constant 0 : index
    %c0_90 = arith.constant 0 : index
    %64 = vector.load %arg8[%c0_87, %c0_88, %c0_89, %c0_90] : memref<1x8x8x128xf32, #tpu.memory_space<vmem>>, vector<1x8x8x128xf32>
    tpu.vector_store %arg8[%c0_87, %c0_88, %c0_89, %c0_90], %63 {strides = array<i32>} : memref<1x8x8x128xf32, #tpu.memory_space<vmem>>, vector<1x8x8x128xf32>,
    return
  }
  func.func @transform_0(%arg0: i32) -> (i32, i32, i32, i32) {
    %c0_i32 = arith.constant 0 : i32
    %c0_i32_0 = arith.constant 0 : i32
    %c0_i32_1 = arith.constant 0 : i32
    %c0_i32_2 = arith.constant 0 : i32
    return %arg0, %c0_i32, %c0_i32_0, %c0_i32_1 : i32, i32, i32, i32
  }
  func.func @transform_1(%arg0: i32) -> (i32, i32) {
    %c0_i32 = arith.constant 0 : i32
    %c0_i32_0 = arith.constant 0 : i32
    %c0_i32_1 = arith.constant 0 : i32
    return %c0_i32, %c0_i32_0 : i32, i32
  }
  func.func @transform_2(%arg0: i32) -> (i32, i32) {
    %c0_i32 = arith.constant 0 : i32
    %c0_i32_0 = arith.constant 0 : i32
    %c0_i32_1 = arith.constant 0 : i32
    return %c0_i32, %c0_i32_0 : i32, i32
  }
  func.func @transform_3(%arg0: i32) -> (i32, i32) {
    %c0_i32 = arith.constant 0 : i32
    %c0_i32_0 = arith.constant 0 : i32
    %c0_i32_1 = arith.constant 0 : i32
    return %c0_i32, %c0_i32_0 : i32, i32
  }
  func.func @transform_4(%arg0: i32) -> (i32, i32) {
    %c0_i32 = arith.constant 0 : i32
    %c0_i32_0 = arith.constant 0 : i32
    %c0_i32_1 = arith.constant 0 : i32
    return %c0_i32, %c0_i32_0 : i32, i32
  }
  func.func @transform_5(%arg0: i32) -> (i32, i32) {
    %c0_i32 = arith.constant 0 : i32
    %c0_i32_0 = arith.constant 0 : i32
    %c0_i32_1 = arith.constant 0 : i32
    return %c0_i32, %c0_i32_0 : i32, i32
  }
  func.func @transform_6(%arg0: i32) -> (i32, i32) {
    %c0_i32 = arith.constant 0 : i32
    %c0_i32_0 = arith.constant 0 : i32
    %c0_i32_1 = arith.constant 0 : i32
    return %c0_i32, %c0_i32_0 : i32, i32
  }
  func.func @transform_7(%arg0: i32) -> (i32, i32, i32, i32) {
    %c0_i32 = arith.constant 0 : i32
    %c0_i32_0 = arith.constant 0 : i32
    %c0_i32_1 = arith.constant 0 : i32
    %c0_i32_2 = arith.constant 0 : i32
    return %arg0, %c0_i32, %c0_i32_0, %c0_i32_1 : i32, i32, i32, i32
  }
}

</mosaic_0001>

<bundles_post_ra>
// kernel: bottleneck_c2d.1
= control target key start
LH: loop header
LB: loop body
LE: loop exit
PB: predicated region body
PF: predicated region fallthrough
CT: control target
= control target key end

     0   :  { %12 = vsyncpa [#allocation5], 0  ;;  %s3212_s0 = inlined_call_operand.hbm [shape: f32[8,8,8,128], index: 0, kind: input, shape index: {}]   ;;  %s3213_s1 = inlined_call_operand.vmem [shape: bf16[128,32], index: 1, kind: input, shape index: {}]   ;;  %s3214_s2 = inlined_call_operand.vmem [shape: bf16[288,32], index: 2, kind: input, shape index: {}]   ;;  %s3215_s3 = inlined_call_operand.vmem [shape: bf16[32,128], index: 3, kind: input, shape index: {}]   ;;  %s3216_s4 = inlined_call_operand.vmem [shape: f32[1,32], index: 4, kind: input, shape index: {}]   ;;  %s3217_s5 = inlined_call_operand.vmem [shape: f32[1,32], index: 5, kind: input, shape index: {}]   ;;  %s3218_s6 = inlined_call_operand.vmem [shape: f32[1,128], index: 6, kind: input, shape index: {}]   ;;  %s3219_s7 = inlined_call_operand.hbm [shape: f32[8,8,8,128], index: 7, kind: output, shape index: {}]  }
   0x1   :  { %14 = vsyncpa [#allocation5 + $0x1], 0 }
   0x2   :  { %15 = vsyncpa [#allocation6], 0 }
   0x3   :  { %17 = vsyncpa [#allocation6 + $0x1], 0  ;;  %s2571_s24 = smov 0   ;;  %s2573_s25 = smov 0  }
   0x4   :  { %s2575_s26 = smov 0   ;;  %s2577_s27 = smov 0  }
   0x5 LB: > { %s2592_s28 = sadd.s32 4294967295, %s2519_s27   ;;  %s2072_s29 = sadd.s32 4294967294, %s2519_s27   ;;  %s2519_s27 = sphi %s2577_s27, %s3241_s27   ;;  %s2515_s26 = sphi %s2575_s26, %s3240_s26   ;;  %s2511_s25 = sphi %s2573_s25, %s3239_s25   ;;  %s2507_s24 = sphi %s2571_s24, %s3238_s24  }
   0x6   : > { %s2596_s30 = sadd.s32 1, %s2519_s27   ;;  %s30_s8 = sadd.s32 1, %s2515_s26 }
   0x7   : > { %s27_s9 = ssub.s32 %s2519_s27, %s2596_s30  ;;  %p37_p0 = scmp.ne.s32.totalorder %s2515_s26, %s2511_s25 }
   0x8   : > { %p28_p1 = scmp.eq.s32.totalorder %s27_s9, 0  ;;  %p38_p2 = scmp.eq.s32.totalorder %s2519_s27, 0 }
   0x9   : > { %p43_p3 = scmp.ne.s32.totalorder %s2511_s25, %s2507_s24  ;;  %p44_p4 = scmp.eq.s32.totalorder %s2592_s28, 0 }
   0xa   : > { %s2608_s10 = scalar_select %p28_p1, %s2515_s26, %s30_s8  }
   0xb   : > { %p2610_p5 = por %p38_p2, %p37_p0  ;;  %p2614_p6 = por %p44_p4, %p43_p3 }
   0xc   : > { %p193_p7 = scmp.eq.s32.totalorder %s2592_s28, 7  ;;  %p199_p8 = scmp.eq.s32.totalorder %s2072_s29, 7 }
   0xd   : > { %p2331_p9 = scmp.lt.s32.totalorder %s2519_s27, 8  ;;  %s237_s15 = sand.u32 1, %s2515_s26  }
   0xe   : > { %p2620_p10 = por %p193_p7, %p37_p0  ;;  %p2624_p11 = por %p199_p8, %p43_p3 }
   0xf   : > { %s2193_s16 = sshll.u32 %s2519_s27, 10  ;;  %s2075_s17 = sshll.u32 %s237_s15, 6 }
  0x10   : > { %s3223_s13 = scalar_select %p2620_p10, 1, 0 }
  0x11   : > { %s3224_s14 = scalar_select %p2624_p11, 1, 0 }
  0x12   : > { %s2633_s20 = scalar_lea.hbm %s3212_s0, %s2193_s16  ;;  %s241_s21 = scalar_lea.vmem [#allocation4], %s2075_s17 }
  0x13   : > { %s248_s22 = sshll.u32 %s241_s21, 4  ;;  %p2637_p12 = pnand %p2331_p9, %p2610_p5  ;;  %s2641_s22 = int_to_ptr.vmem [resolvable:$true] %s248_s22 }
  0x14   : > { %s2643_s29 = scalar_lea.sflag [#allocation5], %s237_s15  ;;  %s2423_s8 = scalar_lea.hbm %s2633_s20, 1024 }
  0x15   : > { %p2424_p13 = scmp.ne.s32.totalorder %s2633_s20, %s2423_s8  ;;  %p2425_p0 = pneg %p2637_p12 }
  0x16   : > { %s2428_s16 = scalar_lea.hbm %s3212_s0, 8192  ;;  %p2429_p3 = scmp.lt.u32.totalorder %s2633_s20, %s3212_s0 }
  0x17   : > { %p2426_p1 = pnand %p2425_p0, %p2424_p13  ;;  %p2430_p4 = scmp.lt.u32.totalorder %s2428_s16, %s2423_s8 }
  0x18   : > { %p2432_p7 = scmp.lt.u32.totalorder %s2423_s8, %s2633_s20 }
  0x19   : > { %p2427_p2 = pneg %p2426_p1  ;;  %p2431_p5 = por %p2430_p4, %p2429_p3 }
  0x1b   : > { %p2433_p8 = por %p2432_p7, %p2431_p5 }
  0x1d   : > { %p2434_p9 = pnand %p2433_p8, %p2427_p2 }
  0x1f   : > { %2437 = shalt.err (!%p2434_p9)
}
  0x20   : > { %s2438_s15 = scalar_lea.vmem %s2641_s22, 1024  ;;  %s2521_s19 = smov [#allocation4]  }
  0x21   : > { %p2439_p13 = scmp.ne.s32.totalorder %s2641_s22, %s2438_s15  ;;  %s2443_s21 = sshll.u32 %s2521_s19, 4  ;;  %s2444_s21 = int_to_ptr.vmem [resolvable:$false] %s2443_s21 }
  0x22   : > { %s2445_s9 = scalar_lea.vmem %s2444_s21, 2048  ;;  %p2446_p10 = scmp.lt.s32.totalorder %s2641_s22, %s2444_s21 }
  0x23   : > { %p2441_p1 = pnand %p2439_p13, %p2425_p0  ;;  %p2447_p3 = scmp.lt.s32.totalorder %s2445_s9, %s2438_s15 }
  0x25   : > { %p2442_p11 = pneg %p2441_p1  ;;  %p2448_p4 = por %p2447_p3, %p2446_p10 }
  0x27   : > { %p2449_p5 = pnand %p2448_p4, %p2442_p11 }
  0x29   : > { %2452 = shalt.err (!%p2449_p5)
}
  0x2a   : > { %s2522_s8 = smov 128   ;;  %s2523_s11 = smov 8  }
  0x2b   : > { %2326 = dma.hbm_to_vmem [thread:$0]  (!%p2637_p12), %s2633_s20, 1024, %s2641_s22, %s2643_s29, %s2522_s8, %s2522_s8, %s2523_s11  }
  0x2c   : > { %p2078_p0 = scmp.ge.s32.totalorder %s2519_s27, 1  ;;  %p256_p2 = scmp.lt.s32.totalorder %s2519_s27, 9 }
  0x2e   : > { %p257_p7 = pnand %p2078_p0, %p256_p2 }
  0x2f   : > { %s2674_s16 = sand.u32 (!%p257_p7), 1, %s2511_s25  }
  0x30   : > { %260 = sbr.rel (%p257_p7) target bundleno = 981 (0x3d5), region = 48  ;;  %s2079_s17 = sshll.u32 (!%p257_p7), %s2674_s16, 6 }
  0x31   : > { %s263_s18 = scalar_lea.sflag (!%p257_p7), [#allocation5], %s2674_s16  ;;  %s2680_s15 = scalar_lea.vmem (!%p257_p7), [#allocation4], %s2079_s17 }
  0x37   : > { %2498 = dma.done.wait (%p2614_p6), %s263_s18, 1024  }
  0x38   : > { %2500 = vsyncadd (%p2614_p6), %s263_s18, 4294966272  ;;  %v2373_v0 = vld [vmem:[%s3213_s1] sm:$0xff]   ;;  %v2374_v1 = vld [vmem:[%s3213_s1 + $0x8] sm:$0xff]   ;;  %vm456_vm0 = vcmask 253952   ;;  %vm462_vm1 = vsmask.f32 256 }
  0x39   : > { %2267 = vmatprep.subr.bf16.mxu0 %v2373_v0  ;;  %v2375_v2 = vld [vmem:[%s3213_s1 + $0x10] sm:$0xff]   ;;  %v2376_v3 = vld [vmem:[%s3213_s1 + $0x18] sm:$0xff]   ;;  %v2377_v7 = vld [vmem:[%s3213_s1 + $0x20] sm:$0xff]   ;;  %vm494_vm2 = vsmask.f32 7938  ;;  %vm454_vm3 = vcmask 257024  }
  0x3a   : > { %2268 = vmatpush3.bf16.msra.mxu0 %v2373_v0  ;;  %v298_v4 = vld [vmem:[%s2680_s15] sm:$0xff]  ;;  %v299_v5 = vld [vmem:[%s2680_s15 + $0x8] sm:$0xff]  ;;  %v2378_v8 = vld [vmem:[%s3213_s1 + $0x28] sm:$0xff]   ;;  %v2524_v23 = vmov 0   ;;  %vm910_vm7 = vcmask 1042432   ;;  %vm911_vm8 = vcmask 1046532  }
  0x3b   : > { %2269 = vmatprep.subr.bf16.mxu0 %v2374_v1  ;;  %v306_v6 = vpack.c.bf16 %v299_v5, %v298_v4  ;;  %v2379_v9 = vld [vmem:[%s3213_s1 + $0x30] sm:$0xff]   ;;  %v2380_v10 = vld [vmem:[%s3213_s1 + $0x38] sm:$0xff]   ;;  %v300_v11 = vld [vmem:[%s2680_s15 + $0x10] sm:$0xff]  ;;  %455 = vst.msk [vmem:[#allocation2] sm:$0xf] %vm454_vm3, %v2524_v23  ;;  %s2525_s8 = smov 96  }
  0x3c   : > { %v301_v12 = vld [vmem:[%s2680_s15 + $0x18] sm:$0xff]  ;;  %v302_v13 = vld [vmem:[%s2680_s15 + $0x20] sm:$0xff]  ;;  %v303_v14 = vld [vmem:[%s2680_s15 + $0x28] sm:$0xff]  ;;  %457 = vst.msk [vmem:[#allocation2 + $0x4] sm:$0x1] %vm456_vm0, %v2524_v23  ;;  %vm713_vm10 = vcmask 261120  }
  0x3d   : > { %2283 = vmatprep.mubr.bf16.mxu0 %v306_v6  ;;  %v307_v15 = vpack.c.bf16 %v301_v12, %v300_v11  ;;  %v308_v16 = vpack.c.bf16 %v303_v14, %v302_v13  ;;  %v304_v17 = vld [vmem:[%s2680_s15 + $0x30] sm:$0xff]  ;;  %v305_v18 = vld [vmem:[%s2680_s15 + $0x38] sm:$0xff]  ;;  %vm2718_vm4 = vmand %vm456_vm0, %vm462_vm1  ;;  %459 = vst.msk [vmem:[#allocation2 + $0x48] sm:$0xf] %vm454_vm3, %v2524_v23  ;;  %vm734_vm11 = vsmask.f32 3328 }
  0x3e   : > { %2270 = vmatpush3.bf16.msra.mxu0 %v2374_v1  ;;  %v309_v19 = vpack.c.bf16 %v305_v18, %v304_v17  ;;  %v473_v21 = vld [vmem:[#allocation2 + $0x18] sm:$0x1]  ;;  %v505_v22 = vld [vmem:[#allocation2 + $0x1c] sm:$0x1]  ;;  %460 = vst.msk [vmem:[#allocation2 + $0x4c] sm:$0x1] %vm456_vm0, %v2524_v23  ;;  %vm2727_vm5 = vmand %vm456_vm0, %vm494_vm2 }
  0x3f   : > { %2271 = vmatprep.subr.bf16.mxu0 %v2375_v2  ;;  %v474_v24 = vsel %vm2718_vm4, 0, %v473_v21  ;;  %v467_v26 = vld [vmem:[#allocation2 + $0x8] sm:$0x1]  ;;  %v499_v27 = vld [vmem:[#allocation2 + $0xc] sm:$0x1]  ;;  %v506_v28 = vsel %vm2727_vm5, 0, %v505_v22  ;;  %vm2753_vm6 = vmand %vm454_vm3, %vm494_vm2 }
  0x40   : > { %475 = vst [vmem:[#allocation2 + $0x18] sm:$0x1] %v474_v24  ;;  %v468_v29 = vsel %vm2718_vm4, 0, %v467_v26  ;;  %v500_v30 = vsel %vm2727_vm5, 0, %v499_v27  ;;  %v476_v31 = vld [vmem:[#allocation2 + $0x20] sm:$0x1]  ;;  %vm2878_vm9 = vmor %vm910_vm7, %vm911_vm8 }
  0x41   : > { %507 = vst [vmem:[#allocation2 + $0x1c] sm:$0x1] %v506_v28  ;;  %469 = vst [vmem:[#allocation2 + $0x8] sm:$0x1] %v468_v29  ;;  %v477_v32 = vsel %vm2718_vm4, 0, %v476_v31  ;;  %v2778_v0 = vld [vmem:[%s3214_s2 + $0x80] sm:$0xff]  }
  0x42   : > { %2272 = vmatpush3.bf16.msra.mxu0 %v2375_v2  ;;  %501 = vst [vmem:[#allocation2 + $0xc] sm:$0x1] %v500_v30  ;;  %v508_v33 = vld [vmem:[#allocation2 + $0x24] sm:$0x1]  ;;  %v470_v34 = vld [vmem:[#allocation2 + $0x10] sm:$0x1] }
  0x43   : > { %2273 = vmatprep.subr.bf16.mxu0 %v2376_v3  ;;  %478 = vst [vmem:[#allocation2 + $0x20] sm:$0x1] %v477_v32  ;;  %v509_v35 = vsel %vm2727_vm5, 0, %v508_v33  ;;  %v471_v36 = vsel %vm2718_vm4, 0, %v470_v34  ;;  %v502_v37 = vld [vmem:[#allocation2 + $0x14] sm:$0x1] }
  0x44   : > { %510 = vst [vmem:[#allocation2 + $0x24] sm:$0x1] %v509_v35  ;;  %472 = vst [vmem:[#allocation2 + $0x10] sm:$0x1] %v471_v36  ;;  %v503_v38 = vsel %vm2727_vm5, 0, %v502_v37  ;;  %v2386_v1 = vld [vmem:[%s3214_s2 + $0x88] sm:$0xff]  }
  0x45   : > { %504 = vst [vmem:[#allocation2 + $0x14] sm:$0x1] %v503_v38  ;;  %v464_v39 = vld [vmem:[#allocation2] sm:$0x1]  ;;  %v491_v40 = vld [vmem:[#allocation2 + $0x48] sm:$0x1] }
  0x46   : > { %2274 = vmatpush3.bf16.msra.mxu0 %v2376_v3  ;;  %v496_v41 = vld [vmem:[#allocation2 + $0x4] sm:$0x1]  ;;  %v465_v42 = vsel %vm2718_vm4, 0, %v464_v39  ;;  %v492_v43 = vsel %vm2718_vm4, 0, %v491_v40  ;;  %v523_v45 = vld [vmem:[#allocation2 + $0x4c] sm:$0x1] }
  0x47   : > { %2275 = vmatprep.subr.bf16.mxu0 %v2377_v7  ;;  %v497_v44 = vsel %vm2727_vm5, 0, %v496_v41  ;;  %466 = vst [vmem:[#allocation2] sm:$0x1] %v465_v42  ;;  %493 = vst [vmem:[#allocation2 + $0x48] sm:$0x1] %v492_v43  ;;  %v524_v47 = vsel %vm2727_vm5, 0, %v523_v45 }
  0x48   : > { %498 = vst [vmem:[#allocation2 + $0x4] sm:$0x1] %v497_v44  ;;  %525 = vst [vmem:[#allocation2 + $0x4c] sm:$0x1] %v524_v47  ;;  %v485_v48 = vld [vmem:[#allocation2 + $0x38] sm:$0x1] }
  0x49   : > { %v486_v49 = vsel %vm2718_vm4, 0, %v485_v48  ;;  %v517_v50 = vld [vmem:[#allocation2 + $0x3c] sm:$0x1]  ;;  %v479_v52 = vld [vmem:[#allocation2 + $0x28] sm:$0x1]  ;;  %v2391_v2 = vld [vmem:[%s3214_s2 + $0x40] sm:$0xff]  }
  0x4a   : > { %2276 = vmatpush3.bf16.msra.mxu0 %v2377_v7  ;;  %487 = vst [vmem:[#allocation2 + $0x38] sm:$0x1] %v486_v49  ;;  %v518_v51 = vsel %vm2727_vm5, 0, %v517_v50  ;;  %v511_v53 = vld [vmem:[#allocation2 + $0x2c] sm:$0x1]  ;;  %v480_v54 = vsel %vm2718_vm4, 0, %v479_v52  ;;  %2215 = vmatprep.subr.bf16.mxu1 %v2391_v2 }
  0x4b   : > { %2277 = vmatprep.subr.bf16.mxu0 %v2378_v8  ;;  %519 = vst [vmem:[#allocation2 + $0x3c] sm:$0x1] %v518_v51  ;;  %v512_v55 = vsel %vm2727_vm5, 0, %v511_v53  ;;  %v488_v56 = vld [vmem:[#allocation2 + $0x40] sm:$0x1]  ;;  %v2395_v20 = vld [vmem:[%s3214_s2 + $0x50] sm:$0xff]  }
  0x4c   : > { %481 = vst [vmem:[#allocation2 + $0x28] sm:$0x1] %v480_v54  ;;  %513 = vst [vmem:[#allocation2 + $0x2c] sm:$0x1] %v512_v55  ;;  %v489_v57 = vsel %vm2718_vm4, 0, %v488_v56  ;;  %s2526_s20 = smov 64  }
  0x4d   : > { %v520_v58 = vld [vmem:[#allocation2 + $0x44] sm:$0x1]  ;;  %v482_v59 = vld [vmem:[#allocation2 + $0x30] sm:$0x1]  ;;  %490 = vst [vmem:[#allocation2 + $0x40] sm:$0x1] %v489_v57 }
  0x4e   : > { %2278 = vmatpush3.bf16.msra.mxu0 %v2378_v8  ;;  %v521_v60 = vsel %vm2727_vm5, 0, %v520_v58  ;;  %v483_v61 = vsel %vm2718_vm4, 0, %v482_v59  ;;  %v514_v62 = vld [vmem:[#allocation2 + $0x34] sm:$0x1]  ;;  %v718_v3 = vld [vmem:[#allocation2] sm:$0xf] }
  0x4f   : > { %2279 = vmatprep.subr.bf16.mxu0 %v2379_v9  ;;  %522 = vst [vmem:[#allocation2 + $0x44] sm:$0x1] %v521_v60  ;;  %484 = vst [vmem:[#allocation2 + $0x30] sm:$0x1] %v483_v61  ;;  %v515_v63 = vsel %vm2727_vm5, 0, %v514_v62  ;;  %v738_v5 = vshrl.u32 %v718_v3, 16 }
  0x50   : > { %516 = vst [vmem:[#allocation2 + $0x34] sm:$0x1] %v515_v63  ;;  %v2791_v4 = vld [vmem:[%s3216_s4] ss:$0 sm:$0xff]  ;;  %v741_v6 = vshll.u32 %v718_v3, 16  ;;  %s2527_s29 = smov 32  }
  0x51   : > { %v2795_v12 = vrot.slane %v738_v5, 4  ;;  %v2800_v17 = vld [vmem:[#allocation2 + $0x4] sm:$0x1]  ;;  %v2803_v21 = vld [vmem:[#allocation2 + $0x48] sm:$0xf]  ;;  %vm873_vm14 = vcmask 523520  }
  0x52   : > { %2280 = vmatpush3.bf16.msra.mxu0 %v2379_v9  ;;  %v2797_v13 = vrot.slane %v741_v6, 5  ;;  %v747_v27 = vshll.u32 %v2800_v17, 16  ;;  %v1419_v30 = vshrl.u32 %v2803_v21, 16  ;;  %v1422_v31 = vshll.u32 %v2803_v21, 16  ;;  %v645_v33 = vld [vmem:[#allocation2 + $0x18] sm:$0xf] }
  0x53   : > { %2281 = vmatprep.subr.bf16.mxu0 %v2380_v10  ;;  %v648_v34 = vld [vmem:[#allocation2 + $0x1c] sm:$0x1]  ;;  %v633_v40 = vld [vmem:[#allocation2 + $0x8] sm:$0xf]  ;;  %v636_v47 = vld [vmem:[#allocation2 + $0xc] sm:$0x1] }
  0x54   : > { %v744_v26 = vor.u32 %v2797_v13, %v2795_v12  ;;  %v651_v55 = vld [vmem:[#allocation2 + $0x20] sm:$0xf]  ;;  %v654_v60 = vld [vmem:[#allocation2 + $0x24] sm:$0x1]  ;;  %v639_v6 = vld [vmem:[#allocation2 + $0x10] sm:$0xf] }
  0x55   : > { %v2392_v63 = vld [vmem:[%s3214_s2] sm:$0xff]   ;;  %v2856_v12 = vrot.slane %v1419_v30, 4  ;;  %v2860_v13 = vrot.slane %v1422_v31, 5  ;;  %vm735_vm12 = vsmask.f32 7440  ;;  %vm969_vm15 = vcmask 785920  }
  0x56   : > { %2282 = vmatpush3.bf16.msra.mxu0 %v2380_v10  ;;  %2216 = vmatpush3.bf16.msra.mxu1 %v2392_v63  ;;  %v663_v63 = vld [vmem:[#allocation2 + $0x30] sm:$0xf]  ;;  %vm2952_vm13 = vmor %vm734_vm11, %vm735_vm12  ;;  %vm1014_vm0 = vcmask 1048320   ;;  %p3236_p10 = scmp.ne.s32.totalorder %s3223_s13, 0 }
  0x57   : > { %2291 = vmatprep.subr.bf16.mxu0 %v2778_v0 }
  0x59   : > { %2284 = vmatmul.mubr.bf16.vlgmr.msra.gmra.mrb[0].mxu0 %v307_v15 }
  0x5a   : > { %2287 = vmatprep.mubr.bf16.mxu0 %v308_v16  ;;  %2292 = vmatpush3.bf16.msra.mxu0 %v2778_v0 }
  0x5b   : > { %2293 = vmatprep.subr.bf16.mxu0 %v2386_v1 }
  0x5e   : > { %2294 = vmatpush3.bf16.msra.mxu0 %v2386_v1 }
  0x61   : > { %2288 = vmatmul.mubr.bf16.gmra.mrb[4].mxu0 %v309_v19 }
 0x12c   : > { %v2285_v7 = vpop.f32.mrb[0].mxu0 }
 0x12d   : > { %v424_v8 = vadd.f32 %v2285_v7, %v2791_v4  ;;  %v415_v9 = vpop.f32.mrb[1].mxu0  ;;  %v642_v7 = vld [vmem:[#allocation2 + $0x14] sm:$0x1] }
 0x12e   : > { %v416_v10 = vadd.f32 %v2791_v4, %v415_v9  ;;  %v2286_v11 = vpop.f32.mrb[2].mxu0 }
 0x12f   : > { %v448_v14 = vmax.f32 %v424_v8, 0.0  ;;  %v427_v15 = vadd.f32 %v2286_v11, %v2791_v4  ;;  %v418_v16 = vpop.f32.mrb[3].mxu0 }
 0x130   : > { %v446_v18 = vmax.f32 %v416_v10, 0.0  ;;  %v419_v19 = vadd.f32 %v2791_v4, %v418_v16 }
 0x131   : > { %v2196_v22 = vpack.c.bf16 %v448_v14, %v448_v14  ;;  %v449_v23 = vmax.f32 %v427_v15, 0.0 }
 0x132   : > { %v2194_v24 = vpack.c.bf16 %v446_v18, %v446_v18  ;;  %v447_v25 = vmax.f32 %v419_v19, 0.0  ;;  %v2827_v19 = vld [vmem:[#allocation2] sm:$0xe] }
 0x133   : > { %v567_v28 = vshrl.u32 %v2196_v22, 16  ;;  %v2197_v29 = vpack.c.bf16 %v449_v23, %v449_v23  ;;  %v570_v32 = vshll.u32 %v2196_v22, 16  ;;  %v2829_v22 = vld [vmem:[#allocation2 + $0x4] sm:$0x1] }
 0x134   : > { %v551_v35 = vshrl.u32 %v2194_v24, 16  ;;  %v554_v36 = vshll.u32 %v2194_v24, 16  ;;  %v2195_v37 = vpack.c.bf16 %v447_v25, %v447_v25  ;;  %v2289_v38 = vpop.f32.mrb[4].mxu0 }
 0x135   : > { %v569_v39 = vrot.slane %v567_v28, 7  ;;  %v575_v41 = vshrl.u32 %v2197_v29, 16  ;;  %v578_v42 = vshll.u32 %v2197_v29, 16  ;;  %v440_v43 = vadd.f32 %v2289_v38, %v2791_v4  ;;  %v431_v44 = vpop.f32.mrb[5].mxu0 }
 0x136   : > { %v553_v45 = vrot.slane %v551_v35, 7  ;;  %v559_v48 = vshrl.u32 %v2195_v37, 16  ;;  %v562_v49 = vshll.u32 %v2195_v37, 16  ;;  %v432_v50 = vadd.f32 %v2791_v4, %v431_v44  ;;  %v2290_v51 = vpop.f32.mrb[6].mxu0  ;;  %v669_v35 = vld [vmem:[#allocation2 + $0x38] sm:$0xf] }
 0x137   : > { %v572_v52 = vor.u32 %v570_v32, %v569_v39  ;;  %v573_v53 = vrot.slane %v569_v39, 4  ;;  %v577_v54 = vrot.slane %v575_v41, 7  ;;  %v452_v56 = vmax.f32 %v440_v43, 0.0  ;;  %v434_v57 = vpop.f32.mrb[7].mxu0  ;;  %v657_v37 = vld [vmem:[#allocation2 + $0x28] sm:$0xf] }
 0x138   : > { %v556_v58 = vor.u32 %v554_v36, %v553_v45  ;;  %v557_v59 = vrot.slane %v553_v45, 4  ;;  %v561_v61 = vrot.slane %v559_v48, 7  ;;  %v450_v62 = vmax.f32 %v432_v50, 0.0  ;;  %v672_v36 = vld [vmem:[#allocation2 + $0x3c] sm:$0x1]  ;;  %v2393_v45 = vld [vmem:[%s3214_s2 + $0x48] sm:$0xff]  }
 0x139   : > { %v646_v1 = vsel %vm2753_vm6, %v572_v52, %v645_v33  ;;  %v649_v2 = vsel %vm2718_vm4, %v573_v53, %v648_v34  ;;  %v580_v3 = vor.u32 %v578_v42, %v577_v54  ;;  %v581_v5 = vrot.slane %v577_v54, 4  ;;  %v660_v48 = vld [vmem:[#allocation2 + $0x2c] sm:$0x1]  ;;  %2217 = vmatprep.subr.bf16.mxu1 %v2393_v45 }
 0x13a   : > { %647 = vst [vmem:[#allocation2 + $0x18] sm:$0xf] %v646_v1  ;;  %650 = vst [vmem:[#allocation2 + $0x1c] sm:$0x1] %v649_v2  ;;  %v634_v8 = vsel %vm2753_vm6, %v556_v58, %v633_v40  ;;  %v637_v9 = vsel %vm2718_vm4, %v557_v59, %v636_v47  ;;  %v564_v10 = vor.u32 %v562_v49, %v561_v61  ;;  %v565_v11 = vrot.slane %v561_v61, 4  ;;  %v2394_v47 = vld [vmem:[%s3214_s2 + $0x8] sm:$0xff]  }
 0x13b   : > { %635 = vst [vmem:[#allocation2 + $0x8] sm:$0xf] %v634_v8  ;;  %638 = vst [vmem:[#allocation2 + $0xc] sm:$0x1] %v637_v9  ;;  %v652_v14 = vsel %vm2753_vm6, %v580_v3, %v651_v55  ;;  %v655_v15 = vsel %vm2718_vm4, %v581_v5, %v654_v60  ;;  %v2200_v16 = vpack.c.bf16 %v452_v56, %v452_v56  ;;  %v2106_v40 = vrot.slane %v2827_v19, 9 }
 0x13c   : > { %v2198_v18 = vpack.c.bf16 %v450_v62, %v450_v62  ;;  %653 = vst [vmem:[#allocation2 + $0x20] sm:$0xf] %v652_v14  ;;  %656 = vst [vmem:[#allocation2 + $0x24] sm:$0x1] %v655_v15  ;;  %v640_v23 = vsel %vm2753_vm6, %v564_v10, %v639_v6  ;;  %v643_v24 = vsel %vm2718_vm4, %v565_v11, %v642_v7  ;;  %v915_v41 = vrot.slane %v2829_v22, 5 }
 0x13d   : > { %v443_v25 = vadd.f32 %v2290_v51, %v2791_v4  ;;  %v435_v28 = vadd.f32 %v2791_v4, %v434_v57  ;;  %641 = vst [vmem:[#allocation2 + $0x10] sm:$0xf] %v640_v23  ;;  %644 = vst [vmem:[#allocation2 + $0x14] sm:$0x1] %v643_v24  ;;  %v599_v29 = vshrl.u32 %v2200_v16, 16  ;;  %v602_v32 = vshll.u32 %v2200_v16, 16  ;;  %2218 = vmatpush3.bf16.msra.mxu1 %v2394_v47 }
 0x13e   : > { %v583_v33 = vshrl.u32 %v2198_v18, 16  ;;  %v586_v34 = vshll.u32 %v2198_v18, 16  ;;  %v2842_v4 = vrot.slane %v744_v26, 4  ;;  %v2846_v44 = vrot.slane %v747_v27, 5  ;;  %v675_v61 = vld [vmem:[#allocation2 + $0x40] sm:$0xf]  ;;  %2219 = vmatprep.subr.bf16.mxu1 %v2395_v20 }
 0x13f   : > { %v453_v38 = vmax.f32 %v443_v25, 0.0  ;;  %v451_v39 = vmax.f32 %v435_v28, 0.0  ;;  %v601_v42 = vrot.slane %v599_v29, 7  ;;  %v678_v62 = vld [vmem:[#allocation2 + $0x44] sm:$0x1]  ;;  %v1425_v22 = vor.u32 %v2860_v13, %v2856_v12 }
 0x140   : > { %v585_v43 = vrot.slane %v583_v33, 7  ;;  %v666_v1 = vld [vmem:[#allocation2 + $0x34] sm:$0x1]  ;;  %v2882_v15 = vld [vmem:[#allocation2 + $0x48] sm:$0xe] }
 0x141   : > { %v2201_v49 = vpack.c.bf16 %v453_v38, %v453_v38  ;;  %v2199_v50 = vpack.c.bf16 %v451_v39, %v451_v39  ;;  %v604_v17 = vor.u32 %v602_v32, %v601_v42  ;;  %v605_v26 = vrot.slane %v601_v42, 4  ;;  %v1171_v52 = vld [vmem:[#allocation2 + $0x18] sm:$0xe]  ;;  %v1172_v57 = vld [vmem:[#allocation2 + $0x1c] sm:$0x1] }
 0x142   : > { %v588_v27 = vor.u32 %v586_v34, %v585_v43  ;;  %v589_v51 = vrot.slane %v585_v43, 4  ;;  %v2128_v11 = vrot.slane %v1171_v52, 9  ;;  %v1209_v14 = vrot.slane %v1172_v57, 5  ;;  %v2884_v16 = vld [vmem:[#allocation2 + $0x4c] sm:$0x1] }
 0x143   : > { %v607_v53 = vshrl.u32 %v2201_v49, 16  ;;  %v610_v54 = vshll.u32 %v2201_v49, 16  ;;  %v591_v55 = vshrl.u32 %v2199_v50, 16  ;;  %v594_v56 = vshll.u32 %v2199_v50, 16  ;;  %v2862_v58 = vld [vmem:[#allocation2 + $0x20] sm:$0xe] }
 0x144   : > { %v2864_v30 = vld [vmem:[#allocation2 + $0x24] sm:$0x1]  ;;  %v670_v21 = vsel %vm2753_vm6, %v604_v17, %v669_v35  ;;  %v673_v31 = vsel %vm2718_vm4, %v605_v26, %v672_v36  ;;  %v658_v59 = vsel %vm2753_vm6, %v588_v27, %v657_v37  ;;  %v661_v60 = vsel %vm2718_vm4, %v589_v51, %v660_v48  ;;  %v2381_v7 = vld [vmem:[#allocation2 + $0x18] ss:$8 sps:$4 sm:$0xff]   ;;  %v1167_v34 = vld [vmem:[#allocation2 + $0x8] sm:$0xe] }
 0x145   : > { %v2148_v2 = vrot.slane %v2862_v58, 9  ;;  %v1502_v3 = vrot.slane %v2864_v30, 5  ;;  %671 = vst [vmem:[#allocation2 + $0x38] sm:$0xf] %v670_v21  ;;  %674 = vst [vmem:[#allocation2 + $0x3c] sm:$0x1] %v673_v31  ;;  %1004 = vrot.lane.b32.xlu1 %v2381_v7, %s2525_s8  ;;  %v1210_v28 = vsel %vm2878_vm9, %v2128_v11, %v1209_v14  ;;  %v916_v58 = vsel %vm2878_vm9, %v2106_v40, %v915_v41 }
 0x146   : > { %659 = vst [vmem:[#allocation2 + $0x28] sm:$0xf] %v658_v59  ;;  %662 = vst [vmem:[#allocation2 + $0x2c] sm:$0x1] %v661_v60  ;;  %v609_v5 = vrot.slane %v607_v53, 7  ;;  %v593_v6 = vrot.slane %v591_v55, 7 }
 0x147   : > { %v1173_v9 = vld [vmem:[#allocation2 + $0x20] sm:$0xe]  ;;  %v1174_v10 = vld [vmem:[#allocation2 + $0x24] sm:$0x1]  ;;  %v2382_v33 = vld [vmem:[#allocation2 + $0x10] ss:$8 sps:$4 sm:$0xff]  }
 0x148   : > { %v612_v18 = vor.u32 %v610_v54, %v609_v5  ;;  %v613_v23 = vrot.slane %v609_v5, 4  ;;  %v596_v24 = vor.u32 %v594_v56, %v593_v6  ;;  %v597_v25 = vrot.slane %v593_v6, 4  ;;  %v1168_v39 = vld [vmem:[#allocation2 + $0xc] sm:$0x1]  ;;  %v1169_v42 = vld [vmem:[#allocation2 + $0x10] sm:$0xe] }
 0x149   : > { %v2129_v29 = vrot.slane %v1173_v9, 9  ;;  %v1213_v32 = vrot.slane %v1174_v10, 5  ;;  %v1170_v43 = vld [vmem:[#allocation2 + $0x14] sm:$0x1]  ;;  %v2126_v47 = vrot.slane %v1167_v34, 9  ;;  %v1201_v48 = vrot.slane %v1168_v39, 5  ;;  %1288 = vrot.lane.b32.xlu1 %v2382_v33, %s2526_s20 }
 0x14a   : > { %v676_v35 = vsel %vm2753_vm6, %v612_v18, %v675_v61  ;;  %v679_v36 = vsel %vm2718_vm4, %v613_v23, %v678_v62  ;;  %v664_v37 = vsel %vm2753_vm6, %v596_v24, %v663_v63  ;;  %v667_v38 = vsel %vm2718_vm4, %v597_v25, %v666_v1  ;;  %v2903_v17 = vld [vmem:[#allocation2 + $0x4c] sm:$0x1]  ;;  %v2396_v26 = vld [vmem:[%s3214_s2 + $0x10] sm:$0xff]   ;;  %v1462_v61 = vld [vmem:[#allocation2 + $0x18] sm:$0xe] }
 0x14b   : > { %677 = vst [vmem:[#allocation2 + $0x40] sm:$0xf] %v676_v35  ;;  %680 = vst [vmem:[#allocation2 + $0x44] sm:$0x1] %v679_v36  ;;  %v1214_v45 = vsel %vm2878_vm9, %v2129_v29, %v1213_v32  ;;  %v2127_v49 = vrot.slane %v1169_v42, 9  ;;  %v1205_v50 = vrot.slane %v1170_v43, 5  ;;  %v1202_v56 = vsel %vm2878_vm9, %v2126_v47, %v1201_v48  ;;  %2220 = vmatpush3.bf16.msra.mxu1 %v2396_v26 }
 0x14c   : > { %665 = vst [vmem:[#allocation2 + $0x30] sm:$0xf] %v664_v37  ;;  %668 = vst [vmem:[#allocation2 + $0x34] sm:$0x1] %v667_v38  ;;  %v2135_v46 = vcombine.low %v1210_v28, %v1214_v45  ;;  %v2153_v27 = vrot.slane %v2882_v15, 9  ;;  %v1522_v51 = vrot.slane %v2884_v16, 5  ;;  %v1503_v62 = vsel %vm2878_vm9, %v2148_v2, %v1502_v3 }
 0x14d   : > { %v1466_v52 = vld [vmem:[#allocation2 + $0x28] sm:$0xe]  ;;  %v1467_v53 = vld [vmem:[#allocation2 + $0x2c] sm:$0x1]  ;;  %v1206_v57 = vsel %vm2878_vm9, %v2127_v49, %v1205_v50  ;;  %v1460_v59 = vld [vmem:[#allocation2 + $0x10] sm:$0xe] }
 0x14e   : > { %v2149_v54 = vrot.slane %v1466_v52, 9  ;;  %v1506_v55 = vrot.slane %v1467_v53, 5  ;;  %1245 = vrot.lane.b32.xlu0 %v2135_v46, %s2527_s29  ;;  %v2383_v21 = vld [vmem:[#allocation2 + $0x8] ss:$8 sps:$4 sm:$0xff]   ;;  %v2134_v31 = vcombine.low %v1202_v56, %v1206_v57  ;;  %v1461_v60 = vld [vmem:[#allocation2 + $0x14] sm:$0x1]  ;;  %v1523_v29 = vsel %vm2878_vm9, %v2153_v27, %v1522_v51 }
 0x14f   : > { %1002 = vrot.lane.b32.xlu1 %v2383_v21, %s2525_s8  ;;  %v1463_v63 = vld [vmem:[#allocation2 + $0x1c] sm:$0x1]  ;;  %v2146_v1 = vrot.slane %v1460_v59, 9  ;;  %v1494_v5 = vrot.slane %v1461_v60, 5  ;;  %v2147_v6 = vrot.slane %v1462_v61, 9  ;;  %v1428_v3 = vshll.u32 %v2903_v17, 16 }
 0x150   : > { %v1507_v7 = vsel %vm2878_vm9, %v2149_v54, %v1506_v55  ;;  %v2397_v9 = vld [vmem:[%s3214_s2 + $0x58] sm:$0xff]   ;;  %v1498_v10 = vrot.slane %v1463_v63, 5  ;;  %v880_v30 = vld [vmem:[#allocation2 + $0x8] sm:$0xe]  ;;  %v881_v11 = vld [vmem:[#allocation2 + $0xc] sm:$0x1]  ;;  %v750_v53 = vsel %vm2952_vm13, %v2842_v4, %v2846_v44 }
 0x151   : > { %v2155_v2 = vcombine.low %v1503_v62, %v1507_v7  ;;  %v2385_v16 = vld [vmem:[#allocation2 + $0x20] ss:$8 sps:$4 sm:$0xff]   ;;  %v1495_v18 = vsel %vm2878_vm9, %v2146_v1, %v1494_v5  ;;  %v2107_v23 = vrot.slane %v880_v30, 9  ;;  %v919_v24 = vrot.slane %v881_v11, 5  ;;  %2221 = vmatprep.subr.bf16.mxu1 %v2397_v9  ;;  %v721_v28 = vld [vmem:[#allocation2 + $0xc] sm:$0x1] }
 0x152   : > { %v1472_v14 = vld [vmem:[#allocation2 + $0x40] sm:$0xe]  ;;  %v1473_v15 = vld [vmem:[#allocation2 + $0x44] sm:$0x1]  ;;  %1243 = vrot.lane.b32.xlu0 %v2134_v31, %s2527_s29  ;;  %v1499_v40 = vsel %vm2878_vm9, %v2147_v6, %v1498_v10  ;;  %v720_v41 = vld [vmem:[#allocation2 + $0x8] sm:$0xf] }
 0x153   : > { %v2152_v19 = vrot.slane %v1472_v14, 9  ;;  %v1518_v25 = vrot.slane %v1473_v15, 5  ;;  %1541 = vst.msk [vmem:[#allocation3 + $0x28] sm:$0xff] %vm713_vm10, %v2155_v2  ;;  %v2154_v32 = vcombine.low %v1495_v18, %v1499_v40  ;;  %v920_v33 = vsel %vm2878_vm9, %v2107_v23, %v919_v24  ;;  %v882_v12 = vld [vmem:[#allocation2 + $0x10] sm:$0xe] }
 0x154   : > { %v752_v34 = vshrl.u32 %v720_v41, 16  ;;  %v755_v35 = vshll.u32 %v720_v41, 16  ;;  %v883_v13 = vld [vmem:[#allocation2 + $0x14] sm:$0x1]  ;;  %v2114_v36 = vcombine.low %v916_v58, %v920_v33  ;;  %v761_v37 = vshll.u32 %v721_v28, 16 }
 0x155   : > { %v884_v38 = vld [vmem:[#allocation2 + $0x18] sm:$0xe]  ;;  %v885_v39 = vld [vmem:[#allocation2 + $0x1c] sm:$0x1]  ;;  %v2108_v42 = vrot.slane %v882_v12, 9  ;;  %v1519_v43 = vsel %vm2878_vm9, %v2152_v19, %v1518_v25  ;;  %1540 = vst.msk [vmem:[#allocation3 + $0x10] sm:$0xff] %vm713_vm10, %v2154_v32 }
 0x156   : > { %1290 = vrot.lane.b32.xlu0 %v2385_v16, %s2526_s20  ;;  %v754_v47 = vrot.slane %v752_v34, 4  ;;  %v757_v48 = vrot.slane %v755_v35, 5  ;;  %v923_v49 = vrot.slane %v883_v13, 5  ;;  %v2109_v20 = vrot.slane %v884_v38, 9  ;;  %957 = vrot.lane.b32.xlu1 %v2114_v36, %s2526_s20  ;;  %v1304_v55 = vld [vmem:[#allocation2 + $0x10] sm:$0xf] }
 0x157   : > { %v927_v46 = vrot.slane %v885_v39, 5  ;;  %v2957_v50 = vrot.slane %v1425_v22, 4  ;;  %v2157_v17 = vcombine.low %v1519_v43, %v1523_v29  ;;  %v763_v27 = vrot.slane %v761_v37, 5  ;;  %v1305_v56 = vld [vmem:[#allocation2 + $0x14] sm:$0x1]  ;;  %v2398_v25 = vld [vmem:[%s3214_s2 + $0x18] sm:$0xff]  }
 0x158   : > { %v758_v26 = vor.u32 %v757_v48, %v754_v47  ;;  %v924_v51 = vsel %vm2878_vm9, %v2108_v42, %v923_v49  ;;  %v2961_v52 = vrot.slane %v1428_v3, 5  ;;  %v1306_v57 = vld [vmem:[#allocation2 + $0x18] sm:$0xf]  ;;  %v1307_v60 = vld [vmem:[#allocation2 + $0x1c] sm:$0x1]  ;;  %v1321_v61 = vshrl.u32 %v1304_v55, 16  ;;  %2222 = vmatpush3.bf16.msra.mxu1 %v2398_v25 }
 0x159   : > { %v928_v54 = vsel %vm2878_vm9, %v2109_v20, %v927_v46  ;;  %1543 = vst.msk [vmem:[#allocation3 + $0x58] sm:$0xff] %vm713_vm10, %v2157_v17  ;;  %v1324_v62 = vshll.u32 %v1304_v55, 16  ;;  %v1330_v63 = vshll.u32 %v1305_v56, 16  ;;  %v1335_v1 = vshrl.u32 %v1306_v57, 16  ;;  %v722_v7 = vld [vmem:[#allocation2 + $0x10] sm:$0xf] }
 0x15a   : > { %v759_v21 = vrot.slane %v758_v26, 4  ;;  %v2115_v31 = vcombine.low %v924_v51, %v928_v54  ;;  %v1549_v59 = vld [vmem:[#allocation3 + $0x28] sm:$0xff]  ;;  %v1338_v5 = vshll.u32 %v1306_v57, 16  ;;  %v1344_v6 = vshll.u32 %v1307_v60, 16  ;;  %v2388_v44 = vld [vmem:[#allocation2 + $0x28] ss:$8 sps:$4 sm:$0xff]  }
 0x15b   : > { %v1323_v9 = vrot.slane %v1321_v61, 4  ;;  %v1326_v10 = vrot.slane %v1324_v62, 5  ;;  %v723_v30 = vld [vmem:[#allocation2 + $0x14] sm:$0x1]  ;;  %v724_v11 = vld [vmem:[#allocation2 + $0x18] sm:$0xf] }
 0x15c   : > { %v764_v4 = vsel %vm2952_vm13, %v759_v21, %v763_v27  ;;  %959 = vrot.lane.b32.xlu1 %v2115_v31, %s2526_s20  ;;  %v1546_v58 = vld [vmem:[#allocation3 + $0x10] sm:$0xff]  ;;  %v1332_v3 = vrot.slane %v1330_v63, 5  ;;  %v1337_v14 = vrot.slane %v1335_v1, 4  ;;  %v1340_v15 = vrot.slane %v1338_v5, 5  ;;  %v725_v16 = vld [vmem:[#allocation2 + $0x1c] sm:$0x1] }
 0x15d   : > { %v2102_v2 = vcombine.low %v750_v53, %v764_v4  ;;  %2295 = vmatprep.mubr.msk.bf16.mxu0 %vm713_vm10, %v1546_v58  ;;  %v1327_v18 = vor.u32 %v1326_v10, %v1323_v9  ;;  %v1346_v23 = vrot.slane %v1344_v6, 5  ;;  %v766_v24 = vshrl.u32 %v722_v7, 16  ;;  %v1175_v19 = vld [vmem:[#allocation2 + $0x28] sm:$0xe]  ;;  %v2387_v40 = vld [vmem:[#allocation2 + $0x30] ss:$8 sps:$4 sm:$0xff]  }
 0x15e   : > { %v769_v22 = vshll.u32 %v722_v7, 16  ;;  %2296 = vmatmul.mubr.msk.bf16.vlgmr.msra.gmra.mrb[8].mxu0 %vm713_vm10, %v1549_v59  ;;  %v1341_v41 = vor.u32 %v1340_v15, %v1337_v14  ;;  %v775_v28 = vshll.u32 %v723_v30, 16  ;;  %v780_v29 = vshrl.u32 %v724_v11, 16  ;;  %v1176_v33 = vld [vmem:[#allocation2 + $0x2c] sm:$0x1]  ;;  %v2400_v34 = vld [vmem:[%s3214_s2 + $0x60] sm:$0xff]  }
 0x15f   : > { %861 = vrot.lane.b32.xlu0 %v2102_v2, %s2527_s29  ;;  %v783_v32 = vshll.u32 %v724_v11, 16  ;;  %v1328_v35 = vrot.slane %v1327_v18, 4  ;;  %v768_v12 = vrot.slane %v766_v24, 4  ;;  %v789_v36 = vshll.u32 %v725_v16, 16  ;;  %v1177_v37 = vld [vmem:[#allocation2 + $0x30] sm:$0xe]  ;;  %2223 = vmatprep.subr.bf16.mxu1 %v2400_v34 }
 0x160   : > { %1006 = vrot.lane.b32.xlu1 %v2388_v44, %s2525_s8  ;;  %v771_v13 = vrot.slane %v769_v22, 5  ;;  %v1342_v38 = vrot.slane %v1341_v41, 4  ;;  %v777_v39 = vrot.slane %v775_v28, 5  ;;  %v782_v42 = vrot.slane %v780_v29, 4  ;;  %v1178_v47 = vld [vmem:[#allocation2 + $0x34] sm:$0x1] }
 0x161   : > { %v785_v43 = vrot.slane %v783_v32, 5  ;;  %v1333_v48 = vsel %vm2952_vm13, %v1328_v35, %v1332_v3  ;;  %v791_v20 = vrot.slane %v789_v36, 5  ;;  %v2130_v46 = vrot.slane %v1175_v19, 9  ;;  %v886_v17 = vld [vmem:[#allocation2 + $0x20] sm:$0xe]  ;;  %v2402_v7 = vld [vmem:[%s3214_s2 + $0x68] sm:$0xff]  }
 0x162   : > { %v772_v49 = vor.u32 %v771_v13, %v768_v12  ;;  %v887_v26 = vld [vmem:[#allocation2 + $0x24] sm:$0x1]  ;;  %v1347_v27 = vsel %vm2952_vm13, %v1342_v38, %v1346_v23  ;;  %v1217_v53 = vrot.slane %v1176_v33, 5  ;;  %v2131_v54 = vrot.slane %v1177_v37, 9  ;;  %v888_v55 = vld [vmem:[#allocation2 + $0x28] sm:$0xe] }
 0x163   : > { %1292 = vrot.lane.b32.xlu0 %v2387_v40, %s2526_s20  ;;  %v786_v51 = vor.u32 %v785_v43, %v782_v42  ;;  %v889_v56 = vld [vmem:[#allocation2 + $0x2c] sm:$0x1]  ;;  %v2142_v57 = vcombine.low %v1333_v48, %v1347_v27  ;;  %v1221_v31 = vrot.slane %v1178_v47, 5  ;;  %v2110_v59 = vrot.slane %v886_v17, 9  ;;  %v1308_v60 = vld [vmem:[#allocation2 + $0x20] sm:$0xf] }
 0x164   : > { %v773_v21 = vrot.slane %v772_v49, 4  ;;  %v2401_v61 = vld [vmem:[%s3214_s2 + $0x20] sm:$0xff]   ;;  %v1218_v63 = vsel %vm2878_vm9, %v2130_v46, %v1217_v53  ;;  %v931_v1 = vrot.slane %v887_v26, 5  ;;  %v2111_v5 = vrot.slane %v888_v55, 9  ;;  %v1310_v10 = vld [vmem:[#allocation2 + $0x28] sm:$0xf] }
 0x165   : > { %v787_v62 = vrot.slane %v786_v51, 4  ;;  %v1309_v6 = vld [vmem:[#allocation2 + $0x24] sm:$0x1]  ;;  %v1222_v44 = vsel %vm2878_vm9, %v2131_v54, %v1221_v31  ;;  %v935_v9 = vrot.slane %v889_v56, 5  ;;  %v1349_v30 = vshrl.u32 %v1308_v60, 16  ;;  %2224 = vmatpush3.bf16.msra.mxu1 %v2401_v61  ;;  %v2403_v16 = vld [vmem:[%s3214_s2 + $0x28] sm:$0xff]  }
 0x166   : > { %v778_v4 = vsel %vm2952_vm13, %v773_v21, %v777_v39  ;;  %v2136_v58 = vcombine.low %v1218_v63, %v1222_v44  ;;  %v932_v2 = vsel %vm2878_vm9, %v2110_v59, %v931_v1  ;;  %v1311_v3 = vld [vmem:[#allocation2 + $0x2c] sm:$0x1]  ;;  %v1352_v14 = vshll.u32 %v1308_v60, 16  ;;  %v726_v15 = vld [vmem:[#allocation2 + $0x20] sm:$0xf]  ;;  %2225 = vmatprep.subr.bf16.mxu1 %v2402_v7  ;;  %v2404_v34 = vld [vmem:[%s3214_s2 + $0x70] sm:$0xff]  }
 0x167   : > { %1444 = vrot.lane.b32.xlu0 %v2142_v57, %s2525_s8  ;;  %v792_v11 = vsel %vm2952_vm13, %v787_v62, %v791_v20  ;;  %v936_v23 = vsel %vm2878_vm9, %v2111_v5, %v935_v9  ;;  %v1351_v24 = vrot.slane %v1349_v30, 4  ;;  %v1358_v22 = vshll.u32 %v1309_v6, 16  ;;  %v727_v19 = vld [vmem:[#allocation2 + $0x24] sm:$0x1]  ;;  %v728_v25 = vld [vmem:[#allocation2 + $0x28] sm:$0xf] }
 0x168   : > { %v2103_v18 = vcombine.low %v778_v4, %v792_v11  ;;  %v2116_v40 = vcombine.low %v932_v2, %v936_v23  ;;  %v1354_v41 = vrot.slane %v1352_v14, 5  ;;  %v1363_v28 = vshrl.u32 %v1310_v10, 16  ;;  %v729_v32 = vld [vmem:[#allocation2 + $0x2c] sm:$0x1]  ;;  %v1179_v33 = vld [vmem:[#allocation2 + $0x38] sm:$0xe] }
 0x169   : > { %v1366_v29 = vshll.u32 %v1310_v10, 16  ;;  %v1360_v35 = vrot.slane %v1358_v22, 5  ;;  %v1372_v12 = vshll.u32 %v1311_v3, 16  ;;  %v794_v13 = vshrl.u32 %v726_v15, 16  ;;  %v1180_v37 = vld [vmem:[#allocation2 + $0x3c] sm:$0x1]  ;;  %2226 = vmatpush3.bf16.msra.mxu1 %v2403_v16 }
 0x16a   : > { %863 = vrot.lane.b32.xlu1 %v2103_v18, %s2527_s29  ;;  %v797_v36 = vshll.u32 %v726_v15, 16  ;;  %v1355_v38 = vor.u32 %v1354_v41, %v1351_v24  ;;  %v1365_v39 = vrot.slane %v1363_v28, 4  ;;  %v803_v43 = vshll.u32 %v727_v19, 16  ;;  %v1181_v47 = vld [vmem:[#allocation2 + $0x40] sm:$0xe]  ;;  %2227 = vmatprep.subr.bf16.mxu1 %v2404_v34  ;;  %v2406_v48 = vld [vmem:[%s3214_s2 + $0x30] sm:$0xff]  }
 0x16b   : > { %1247 = vrot.lane.b32.xlu0 %v2136_v58, %s2527_s29  ;;  %v1368_v42 = vrot.slane %v1366_v29, 5  ;;  %v1374_v49 = vrot.slane %v1372_v12, 5  ;;  %v796_v20 = vrot.slane %v794_v13, 4  ;;  %v808_v17 = vshrl.u32 %v728_v25, 16  ;;  %v1182_v26 = vld [vmem:[#allocation2 + $0x44] sm:$0x1] }
 0x16c   : > { %v799_v46 = vrot.slane %v797_v36, 5  ;;  %v1356_v27 = vrot.slane %v1355_v38, 4  ;;  %v805_v53 = vrot.slane %v803_v43, 5  ;;  %v811_v54 = vshll.u32 %v728_v25, 16  ;;  %v890_v55 = vld [vmem:[#allocation2 + $0x30] sm:$0xe] }
 0x16d   : > { %v1369_v51 = vor.u32 %v1368_v42, %v1365_v39  ;;  %v2407_v56 = vld [vmem:[%s3214_s2 + $0x78] sm:$0xff]   ;;  %v810_v21 = vrot.slane %v808_v17, 4  ;;  %v817_v31 = vshll.u32 %v729_v32, 16  ;;  %v2132_v59 = vrot.slane %v1179_v33, 9  ;;  %v891_v60 = vld [vmem:[#allocation2 + $0x34] sm:$0x1]  ;;  %2228 = vmatpush3.bf16.msra.mxu1 %v2406_v48 }
 0x16e   : > { %961 = vrot.lane.b32.xlu1 %v2116_v40, %s2526_s20  ;;  %v800_v57 = vor.u32 %v799_v46, %v796_v20  ;;  %v2408_v61 = vld [vmem:[%s3214_s2 + $0x38] sm:$0xff]   ;;  %v1361_v62 = vsel %vm2952_vm13, %v1356_v27, %v1360_v35  ;;  %v813_v1 = vrot.slane %v811_v54, 5  ;;  %v1225_v5 = vrot.slane %v1180_v37, 5  ;;  %2229 = vmatprep.subr.bf16.mxu1 %v2407_v56  ;;  %v1312_v3 = vld [vmem:[#allocation2 + $0x30] sm:$0xf] }
 0x16f   : > { %v1370_v63 = vrot.slane %v1369_v51, 4  ;;  %v892_v6 = vld [vmem:[#allocation2 + $0x38] sm:$0xe]  ;;  %v819_v4 = vrot.slane %v817_v31, 5  ;;  %v2133_v44 = vrot.slane %v1181_v47, 9  ;;  %v1229_v9 = vrot.slane %v1182_v26, 5 }
 0x170   : > { %v801_v7 = vrot.slane %v800_v57, 4  ;;  %v893_v10 = vld [vmem:[#allocation2 + $0x3c] sm:$0x1]  ;;  %v814_v11 = vor.u32 %v813_v1, %v810_v21  ;;  %v1226_v58 = vsel %vm2878_vm9, %v2132_v59, %v1225_v5  ;;  %v2112_v2 = vrot.slane %v890_v55, 9  ;;  %v1313_v14 = vld [vmem:[#allocation2 + $0x34] sm:$0x1] }
 0x171   : > { %v1375_v30 = vsel %vm2952_vm13, %v1370_v63, %v1374_v49  ;;  %v1230_v18 = vsel %vm2878_vm9, %v2133_v44, %v1229_v9  ;;  %v939_v23 = vrot.slane %v891_v60, 5  ;;  %v1314_v24 = vld [vmem:[#allocation2 + $0x38] sm:$0xf]  ;;  %2230 = vmatpush3.bf16.msra.mxu1 %v2408_v61  ;;  %v2113_v25 = vrot.slane %v892_v6, 9  ;;  %v1315_v41 = vld [vmem:[#allocation2 + $0x3c] sm:$0x1] }
 0x172   : > { %v2143_v15 = vcombine.low %v1361_v62, %v1375_v30  ;;  %v806_v16 = vsel %vm2952_vm13, %v801_v7, %v805_v53  ;;  %v815_v22 = vrot.slane %v814_v11, 4  ;;  %v2137_v19 = vcombine.low %v1226_v58, %v1230_v18  ;;  %2315 = vmatprep.subr.bf16.mxu1 %v2778_v0  ;;  %v730_v34 = vld [vmem:[#allocation2 + $0x30] sm:$0xf]  ;;  %v731_v37 = vld [vmem:[#allocation2 + $0x34] sm:$0x1] }
 0x173   : > { %v943_v40 = vrot.slane %v893_v10, 5  ;;  %v940_v28 = vsel %vm2878_vm9, %v2112_v2, %v939_v23  ;;  %v1377_v29 = vshrl.u32 %v1312_v3, 16  ;;  %v1380_v32 = vshll.u32 %v1312_v3, 16  ;;  %v732_v38 = vld [vmem:[#allocation2 + $0x38] sm:$0xf] }
 0x174   : > { %1446 = vrot.lane.b32.xlu0 %v2143_v15, %s2525_s8  ;;  %v1386_v33 = vshll.u32 %v1313_v14, 16  ;;  %v820_v35 = vsel %vm2952_vm13, %v815_v22, %v819_v4  ;;  %v1391_v13 = vshrl.u32 %v1314_v24, 16  ;;  %v1394_v36 = vshll.u32 %v1314_v24, 16  ;;  %v733_v47 = vld [vmem:[#allocation2 + $0x3c] sm:$0x1] }
 0x175   : > { %v944_v12 = vsel %vm2878_vm9, %v2113_v25, %v943_v40  ;;  %v2104_v0 = vcombine.low %v806_v16, %v820_v35  ;;  %v1379_v42 = vrot.slane %v1377_v29, 4  ;;  %v1382_v43 = vrot.slane %v1380_v32, 5  ;;  %v1316_v60 = vld [vmem:[#allocation2 + $0x40] sm:$0xf]  ;;  %v1317_v5 = vld [vmem:[#allocation2 + $0x44] sm:$0x1] }
 0x176   : > { %v2117_v39 = vcombine.low %v940_v28, %v944_v12  ;;  %v1388_v48 = vrot.slane %v1386_v33, 5  ;;  %v1393_v49 = vrot.slane %v1391_v13, 4  ;;  %v1396_v20 = vrot.slane %v1394_v36, 5  ;;  %v1023_v9 = vld [vmem:[#allocation2 + $0x18] sm:$0xf] }
 0x177   : > { %v1400_v46 = vshll.u32 %v1315_v41, 16  ;;  %865 = vrot.lane.b32.xlu1 %v2104_v0, %s2527_s29  ;;  %v1383_v17 = vor.u32 %v1382_v43, %v1379_v42  ;;  %v822_v26 = vshrl.u32 %v730_v34, 16  ;;  %v825_v27 = vshll.u32 %v730_v34, 16  ;;  %v1024_v2 = vld [vmem:[#allocation2 + $0x1c] sm:$0x1] }
 0x178   : > { %1249 = vrot.lane.b32.xlu0 %v2137_v19, %s2527_s29  ;;  %v831_v51 = vshll.u32 %v731_v37, 16  ;;  %v1397_v53 = vor.u32 %v1396_v20, %v1393_v49  ;;  %v836_v55 = vshrl.u32 %v732_v38, 16  ;;  %v839_v56 = vshll.u32 %v732_v38, 16  ;;  %v1026_v3 = vld [vmem:[#allocation2 + $0x24] sm:$0x1] }
 0x179   : > { %v1402_v54 = vrot.slane %v1400_v46, 5  ;;  %v1384_v57 = vrot.slane %v1383_v17, 4  ;;  %v824_v21 = vrot.slane %v822_v26, 4  ;;  %v827_v31 = vrot.slane %v825_v27, 5  ;;  %v1025_v23 = vld [vmem:[#allocation2 + $0x20] sm:$0xf] }
 0x17a   : > { %v833_v59 = vrot.slane %v831_v51, 5  ;;  %v1398_v61 = vrot.slane %v1397_v53, 4  ;;  %v838_v62 = vrot.slane %v836_v55, 4  ;;  %v841_v63 = vrot.slane %v839_v56, 5  ;;  %v1020_v40 = vld [vmem:[#allocation2 + $0xc] sm:$0x1] }
 0x17b   : > { %v845_v1 = vshll.u32 %v733_v47, 16  ;;  %963 = vrot.lane.b32.xlu1 %v2117_v39, %s2526_s20  ;;  %v1389_v6 = vsel %vm2952_vm13, %v1384_v57, %v1388_v48  ;;  %v828_v7 = vor.u32 %v827_v31, %v824_v21  ;;  %v1405_v4 = vshrl.u32 %v1316_v60, 16  ;;  %v2389_v28 = vld [vmem:[#allocation2 + $0x40] ss:$8 sps:$4 sm:$0xff]   ;;  %v1021_v34 = vld [vmem:[#allocation2 + $0x10] sm:$0xf] }
 0x17c   : > { %v1408_v44 = vshll.u32 %v1316_v60, 16  ;;  %v1403_v10 = vsel %vm2952_vm13, %v1398_v61, %v1402_v54  ;;  %v842_v30 = vor.u32 %v841_v63, %v838_v62  ;;  %v1414_v58 = vshll.u32 %v1317_v5, 16  ;;  %v1022_v35 = vld [vmem:[#allocation2 + $0x14] sm:$0x1]  ;;  %v1019_v43 = vld [vmem:[#allocation2 + $0x8] sm:$0xf] }
 0x17d   : > { %v847_v11 = vrot.slane %v845_v1, 5  ;;  %v2144_v14 = vcombine.low %v1389_v6, %v1403_v10  ;;  %v829_v15 = vrot.slane %v828_v7, 4  ;;  %v1407_v16 = vrot.slane %v1405_v4, 4  ;;  %v2399_v47 = vld [vmem:[#allocation2] ss:$8 sps:$4 sm:$0xff]  }
 0x17e   : > { %v1410_v18 = vrot.slane %v1408_v44, 5  ;;  %v843_v24 = vrot.slane %v842_v30, 4  ;;  %v1416_v22 = vrot.slane %v1414_v58, 5  ;;  %v1064_v19 = vshrl.u32 %v1023_v9, 16  ;;  %v2390_v17 = vld [vmem:[#allocation2 + $0x38] ss:$8 sps:$4 sm:$0xff]  }
 0x17f   : > { %v1067_v25 = vshll.u32 %v1023_v9, 16  ;;  %1448 = vrot.lane.b32.xlu0 %v2144_v14, %s2525_s8  ;;  %v834_v41 = vsel %vm2952_vm13, %v829_v15, %v833_v59  ;;  %v1073_v32 = vshll.u32 %v1024_v2, 16  ;;  %v1087_v33 = vshll.u32 %v1026_v3, 16  ;;  %714 = vst.msk [vmem:[#allocation3] sm:$0xff] %vm713_vm10, %v2399_v47  ;;  %v2405_v56 = vld [vmem:[#allocation2 + $0x10] ss:$8 sps:$4 sm:$0xff]  }
 0x180   : > { %v1411_v29 = vor.u32 %v1410_v18, %v1407_v16  ;;  %v848_v12 = vsel %vm2952_vm13, %v843_v24, %v847_v11  ;;  %v1066_v13 = vrot.slane %v1064_v19, 4  ;;  %v1078_v37 = vshrl.u32 %v1025_v23, 16  ;;  %v1027_v60 = vld [vmem:[#allocation2 + $0x28] sm:$0xf]  ;;  %715 = vst.msk [vmem:[#allocation3 + $0x18] sm:$0xff] %vm713_vm10, %v2405_v56 }
 0x181   : > { %v1069_v36 = vrot.slane %v1067_v25, 5  ;;  %v2105_v38 = vcombine.low %v834_v41, %v848_v12  ;;  %v1431_v39 = vsel %vm2952_vm13, %v2957_v50, %v2961_v52  ;;  %v1075_v42 = vrot.slane %v1073_v32, 5  ;;  %v1028_v5 = vld [vmem:[#allocation2 + $0x2c] sm:$0x1]  ;;  %v1029_v6 = vld [vmem:[#allocation2 + $0x30] sm:$0xf] }
 0x182   : > { %v1412_v0 = vrot.slane %v1411_v29, 4  ;;  %v1080_v49 = vrot.slane %v1078_v37, 4  ;;  %v1081_v20 = vshll.u32 %v1025_v23, 16  ;;  %v1045_v46 = vshll.u32 %v1020_v40, 16  ;;  %v1030_v44 = vld [vmem:[#allocation2 + $0x34] sm:$0x1] }
 0x183   : > { %v1070_v48 = vor.u32 %v1069_v36, %v1066_v13  ;;  %867 = vrot.lane.b32.xlu1 %v2105_v38, %s2527_s29  ;;  %1294 = vrot.lane.b32.xlu0 %v2389_v28, %s2526_s20  ;;  %v1050_v27 = vshrl.u32 %v1021_v34, 16  ;;  %v1053_v51 = vshll.u32 %v1021_v34, 16  ;;  %v1059_v53 = vshll.u32 %v1022_v35, 16  ;;  %v2409_v19 = vld [vmem:[#allocation2 + $0x20] ss:$8 sps:$4 sm:$0xff]   ;;  %s3148_s20 = scalar_lea.vmem [#allocation7], %s2079_s17 }
 0x184   : > { %v1417_v26 = vsel %vm2952_vm13, %v1412_v0, %v1416_v22  ;;  %v1089_v54 = vrot.slane %v1087_v33, 5  ;;  %v1083_v55 = vrot.slane %v1081_v20, 5  ;;  %v1047_v57 = vrot.slane %v1045_v46, 5  ;;  %v1031_v25 = vld [vmem:[#allocation2 + $0x38] sm:$0xf]  ;;  %716 = vst.msk [vmem:[#allocation3 + $0x30] sm:$0xff] %vm713_vm10, %v2409_v19 }
 0x185   : > { %v2145_v50 = vcombine.low %v1417_v26, %v1431_v39  ;;  %v1071_v52 = vrot.slane %v1070_v48, 4  ;;  %v1052_v21 = vrot.slane %v1050_v27, 4  ;;  %v1055_v31 = vrot.slane %v1053_v51, 5  ;;  %v1032_v32 = vld [vmem:[#allocation2 + $0x3c] sm:$0x1]  ;;  %s1999_s17 = sshll.u32 %s3148_s20, 4  ;;  %s3159_s17 = int_to_ptr.vmem [resolvable:$true] %s1999_s17 }
 0x186   : > { %v1036_v59 = vshrl.u32 %v1019_v43, 16  ;;  %v1084_v62 = vor.u32 %v1083_v55, %v1080_v49  ;;  %v1061_v63 = vrot.slane %v1059_v53, 5  ;;  %v1039_v1 = vshll.u32 %v1019_v43, 16  ;;  %v1033_v33 = vld [vmem:[#allocation2 + $0x40] sm:$0xf]  ;;  %s2202_s29 = sshll.u32 %s2592_s28, 10 }
 0x187   : > { %v1076_v61 = vsel %vm2952_vm13, %v1071_v52, %v1075_v42  ;;  %1008 = vrot.lane.b32.xlu1 %v2390_v17, %s2525_s8  ;;  %1450 = vrot.lane.b32.xlu0 %v2145_v50, %s2525_s8  ;;  %v1056_v7 = vor.u32 %v1055_v31, %v1052_v21  ;;  %v1092_v9 = vshrl.u32 %v1027_v60, 16  ;;  %v1095_v10 = vshll.u32 %v1027_v60, 16  ;;  %v1034_v38 = vld [vmem:[#allocation2 + $0x44] sm:$0x1]  ;;  %v2410_v46 = vld [vmem:[#allocation2 + $0x30] ss:$8 sps:$4 sm:$0xff]   ;;  %s3166_s22 = scalar_lea.hbm %s3219_s7, %s2202_s29 }
 0x188   : > { %v1038_v4 = vrot.slane %v1036_v59, 4  ;;  %v1085_v30 = vrot.slane %v1084_v62, 4  ;;  %v1041_v11 = vrot.slane %v1039_v1, 5  ;;  %v1101_v58 = vshll.u32 %v1028_v5, 16  ;;  %v1468_v17 = vld [vmem:[#allocation2 + $0x30] sm:$0xe] }
 0x189   : > { %v1106_v2 = vshrl.u32 %v1029_v6, 16  ;;  %v1057_v3 = vrot.slane %v1056_v7, 4  ;;  %v1094_v14 = vrot.slane %v1092_v9, 4  ;;  %v1097_v15 = vrot.slane %v1095_v10, 5  ;;  %v1469_v50 = vld [vmem:[#allocation2 + $0x34] sm:$0x1] }
 0x18a   : > { %v1109_v16 = vshll.u32 %v1029_v6, 16  ;;  %v1090_v18 = vsel %vm2952_vm13, %v1085_v30, %v1089_v54  ;;  %v1042_v23 = vor.u32 %v1041_v11, %v1038_v4  ;;  %v1103_v24 = vrot.slane %v1101_v58, 5  ;;  %717 = vst.msk [vmem:[#allocation3 + $0x48] sm:$0xff] %vm713_vm10, %v2410_v46  ;;  %v1470_v55 = vld [vmem:[#allocation2 + $0x38] sm:$0xe]  ;;  %s1986_s28 = scalar_lea.sflag [#allocation6], %s2674_s16 }
 0x18b   : > { %v1108_v22 = vrot.slane %v1106_v2, 4  ;;  %v2123_v40 = vcombine.low %v1076_v61, %v1090_v18  ;;  %v1062_v41 = vsel %vm2952_vm13, %v1057_v3, %v1061_v63  ;;  %v1098_v28 = vor.u32 %v1097_v15, %v1094_v14  ;;  %v1471_v56 = vld [vmem:[#allocation2 + $0x3c] sm:$0x1]  ;;  %s2453_s23 = scalar_lea.vmem %s3159_s17, 1024 }
 0x18c   : > { %v1111_v29 = vrot.slane %v1109_v16, 5  ;;  %v1043_v34 = vrot.slane %v1042_v23, 4  ;;  %v1115_v35 = vshll.u32 %v1030_v44, 16  ;;  %v1120_v12 = vshrl.u32 %v1031_v25, 16  ;;  %p2454_p6 = scmp.ne.s32.totalorder %s3159_s17, %s2453_s23 }
 0x18d   : > { %v1123_v13 = vshll.u32 %v1031_v25, 16  ;;  %1164 = vst.msk [vmem:[#allocation3 + $0x20] sm:$0xff] %vm713_vm10, %v2123_v40  ;;  %v1099_v36 = vrot.slane %v1098_v28, 4  ;;  %v1134_v0 = vshrl.u32 %v1033_v33, 16  ;;  %v1129_v47 = vshll.u32 %v1032_v32, 16  ;;  %v2413_v28 = vld [vmem:[%s3214_s2 + $0x80] sm:$0xff]  }
 0x18e   : > { %v1112_v37 = vor.u32 %v1111_v29, %v1108_v22  ;;  %v1048_v39 = vsel %vm2952_vm13, %v1043_v34, %v1047_v57  ;;  %v1122_v42 = vrot.slane %v1120_v12, 4  ;;  %v1117_v20 = vrot.slane %v1115_v35, 5  ;;  %v2414_v29 = vld [vmem:[%s3214_s2 + $0x88] sm:$0xff]   ;;  %p2455_p11 = pnand %p2454_p6, %p3236_p10 }
 0x18f   : > { %v1125_v43 = vrot.slane %v1123_v13, 5  ;;  %v2122_v48 = vcombine.low %v1048_v39, %v1062_v41  ;;  %v1136_v27 = vrot.slane %v1134_v0, 4  ;;  %v1137_v51 = vshll.u32 %v1033_v33, 16 }
 0x190   : > { %v1113_v49 = vrot.slane %v1112_v37, 4  ;;  %v1143_v53 = vshll.u32 %v1034_v38, 16  ;;  %v1104_v52 = vsel %vm2952_vm13, %v1099_v36, %v1103_v24  ;;  %v2150_v57 = vrot.slane %v1468_v17, 9  ;;  %p2456_p12 = pneg %p2455_p11 }
 0x191   : > { %v1126_v26 = vor.u32 %v1125_v43, %v1122_v42  ;;  %1163 = vst.msk [vmem:[#allocation3 + $0x8] sm:$0xff] %vm713_vm10, %v2122_v48  ;;  %v1510_v21 = vrot.slane %v1469_v50, 5  ;;  %v1131_v60 = vrot.slane %v1129_v47, 5  ;;  %v1139_v61 = vrot.slane %v1137_v51, 5  ;;  %v2411_v51 = vld [vmem:[%s3215_s3] sm:$0xff]  }
 0x192   : > { %v1118_v54 = vsel %vm2952_vm13, %v1113_v49, %v1117_v20  ;;  %v2151_v63 = vrot.slane %v1470_v55, 9  ;;  %v1514_v1 = vrot.slane %v1471_v56, 5  ;;  %v1145_v6 = vrot.slane %v1143_v53, 5  ;;  %v1555_v20 = vld [vmem:[#allocation3 + $0x58] sm:$0xff]  ;;  %2303 = vmatprep.subr.bf16.mxu0 %v2411_v51 }
 0x193   : > { %v2124_v31 = vcombine.low %v1104_v52, %v1118_v54  ;;  %v1127_v59 = vrot.slane %v1126_v26, 4  ;;  %v1511_v62 = vsel %vm2878_vm9, %v2150_v57, %v1510_v21  ;;  %v1140_v5 = vor.u32 %v1139_v61, %v1136_v27  ;;  %v2412_v53 = vld [vmem:[%s3215_s3 + $0x8] sm:$0xff]   ;;  %2304 = vmatpush3.bf16.msra.mxu0 %v2411_v51  ;;  %v2158_v52 = vld [vmem:[%s3217_s5] ss:$0 sm:$0xff] }
 0x194   : > { %v1515_v7 = vsel %vm2878_vm9, %v2151_v63, %v1514_v1  ;;  %2305 = vmatprep.subr.bf16.mxu0 %v2412_v53 }
 0x195   : > { %1165 = vst.msk [vmem:[#allocation3 + $0x38] sm:$0xff] %vm713_vm10, %v2124_v31  ;;  %v1132_v4 = vsel %vm2952_vm13, %v1127_v59, %v1131_v60  ;;  %v1141_v44 = vrot.slane %v1140_v5, 4  ;;  %v2156_v9 = vcombine.low %v1511_v62, %v1515_v7 }
 0x197   : > { %v1146_v10 = vsel %vm2952_vm13, %v1141_v44, %v1145_v6  ;;  %1542 = vst.msk [vmem:[#allocation3 + $0x40] sm:$0xff] %vm713_vm10, %v2156_v9  ;;  %2306 = vmatpush3.bf16.msra.mxu0 %v2412_v53  ;;  %v2415_v53 = vld [vmem:[%s2680_s15 + $0x10] sm:$0xff] }
 0x198   : > { %v2125_v30 = vcombine.low %v1132_v4, %v1146_v10 }
 0x19a   : > { %1166 = vst.msk [vmem:[#allocation3 + $0x50] sm:$0xff] %vm713_vm10, %v2125_v30 }
 0x19e   : > { %v1552_v49 = vld [vmem:[#allocation3 + $0x40] sm:$0xff] }
 0x1b7   : > { %v1005_v11 = vpop.permute.xlu1 %1004 }
 0x1bb   : > { %v1289_v58 = vpop.permute.xlu1 %1288 }
 0x1c0   : > { %v1246_v2 = vpop.permute.xlu0 %1245 }
 0x1c1   : > { %1256 = vst.msk [vmem:[#allocation3 + $0x20] sm:$0xff] %vm873_vm14, %v1246_v2  ;;  %v1003_v3 = vpop.permute.xlu1 %1002 }
 0x1c4   : > { %v1244_v8 = vpop.permute.xlu0 %1243 }
 0x1c5   : > { %1255 = vst.msk [vmem:[#allocation3 + $0x8] sm:$0xff] %vm873_vm14, %v1244_v8 }
 0x1c6   : > { %1300 = vst.msk [vmem:[#allocation3 + $0x8] sm:$0xff] %vm969_vm15, %v1289_v58 }
 0x1c8   : > { %v1291_v45 = vpop.permute.xlu0 %1290  ;;  %v958_v14 = vpop.permute.xlu1 %957 }
 0x1c9   : > { %1301 = vst.msk [vmem:[#allocation3 + $0x20] sm:$0xff] %vm969_vm15, %v1291_v45 }
 0x1ce   : > { %v960_v15 = vpop.permute.xlu1 %959 }
 0x1d1   : > { %v862_v16 = vpop.permute.xlu0 %861 }
 0x1d2   : > { %874 = vst.msk [vmem:[#allocation3] sm:$0xff] %vm873_vm14, %v862_v16  ;;  %v1007_v23 = vpop.permute.xlu1 %1006 }
 0x1d3   : > { %970 = vst.msk [vmem:[#allocation3] sm:$0xff] %vm969_vm15, %v958_v14 }
 0x1d4   : > { %1015 = vst.msk [vmem:[#allocation3] sm:$0xff] %vm1014_vm0, %v1003_v3 }
 0x1d5   : > { %v1293_v18 = vpop.permute.xlu0 %1292 }
 0x1d9   : > { %v1445_v24 = vpop.permute.xlu0 %1444 }
 0x1da   : > { %1456 = vst.msk [vmem:[#allocation3 + $0x8] sm:$0xff] %vm1014_vm0, %v1445_v24 }
 0x1db   : > { %v1544_v40 = vld [vmem:[#allocation3] sm:$0xff] }
 0x1dc   : > { %v864_v22 = vpop.permute.xlu1 %863 }
 0x1dd   : > { %875 = vst.msk [vmem:[#allocation3 + $0x18] sm:$0xff] %vm873_vm14, %v864_v22  ;;  %v1248_v19 = vpop.permute.xlu0 %1247 }
 0x1de   : > { %971 = vst.msk [vmem:[#allocation3 + $0x18] sm:$0xff] %vm969_vm15, %v960_v15 }
 0x1df   : > { %1257 = vst.msk [vmem:[#allocation3 + $0x38] sm:$0xff] %vm873_vm14, %v1248_v19 }
 0x1e0   : > { %1016 = vst.msk [vmem:[#allocation3 + $0x18] sm:$0xff] %vm1014_vm0, %v1005_v11  ;;  %v962_v41 = vpop.permute.xlu1 %961 }
 0x1e1   : > { %1302 = vst.msk [vmem:[#allocation3 + $0x38] sm:$0xff] %vm969_vm15, %v1293_v18  ;;  %v1545_v25 = vld [vmem:[#allocation3 + $0x8] sm:$0xff] }
 0x1e2   : > { %1751 = vmatprep.mubr.bf16.mxu1 %v1545_v25 }
 0x1e3   : > { %1752 = vmatmul.mubr.bf16.vlgmr.msra.gmra.mrb[0].mxu1 %v1544_v40 }
 0x1e4   : > { %2317 = vmatpush3.bf16.msra.mxu1 %v2413_v28 }
 0x1e5   : > { %2316 = vmatprep.subr.bf16.mxu1 %v2414_v29 }
 0x1e6   : > { %v1447_v32 = vpop.permute.xlu0 %1446 }
 0x1e7   : > { %1457 = vst.msk [vmem:[#allocation3 + $0x20] sm:$0xff] %vm1014_vm0, %v1447_v32  ;;  %v1547_v12 = vld [vmem:[#allocation3 + $0x18] sm:$0xff] }
 0x1e8   : > { %2318 = vmatpush3.bf16.msra.mxu1 %v2414_v29 }
 0x1e9   : > { %v866_v33 = vpop.permute.xlu1 %865 }
 0x1ea   : > { %v1250_v34 = vpop.permute.xlu0 %1249  ;;  %876 = vst.msk [vmem:[#allocation3 + $0x30] sm:$0xff] %vm873_vm14, %v866_v33 }
 0x1eb   : > { %1258 = vst.msk [vmem:[#allocation3 + $0x50] sm:$0xff] %vm873_vm14, %v1250_v34 }
 0x1ec   : > { %972 = vst.msk [vmem:[#allocation3 + $0x30] sm:$0xff] %vm969_vm15, %v962_v41 }
 0x1ed   : > { %1017 = vst.msk [vmem:[#allocation3 + $0x30] sm:$0xff] %vm1014_vm0, %v1007_v23  ;;  %v964_v13 = vpop.permute.xlu1 %963 }
 0x1ee   : > { %v1548_v35 = vld [vmem:[#allocation3 + $0x20] sm:$0xff] }
 0x1ef   : > { %1759 = vmatprep.mubr.bf16.mxu1 %v1548_v35 }
 0x1f0   : > { %1760 = vmatmul.mubr.bf16.gmra.mrb[4].mxu1 %v1547_v12 }
 0x1f1   : > { %v1449_v36 = vpop.permute.xlu0 %1448 }
 0x1f2   : > { %1458 = vst.msk [vmem:[#allocation3 + $0x38] sm:$0xff] %vm1014_vm0, %v1449_v36 }
 0x1f4   : > { %v1550_v43 = vld [vmem:[#allocation3 + $0x30] sm:$0xff] }
 0x1f5   : > { %v868_v37 = vpop.permute.xlu1 %867  ;;  %v1295_v38 = vpop.permute.xlu0 %1294 }
 0x1f6   : > { %877 = vst.msk [vmem:[#allocation3 + $0x48] sm:$0xff] %vm873_vm14, %v868_v37 }
 0x1f7   : > { %1303 = vst.msk [vmem:[#allocation3 + $0x50] sm:$0xff] %vm969_vm15, %v1295_v38  ;;  %973 = vst.msk [vmem:[#allocation3 + $0x48] sm:$0xff] %vm969_vm15, %v964_v13 }
 0x1f9   : > { %v1009_v0 = vpop.permute.xlu1 %1008  ;;  %v1451_v39 = vpop.permute.xlu0 %1450  ;;  %v1551_v42 = vld [vmem:[#allocation3 + $0x38] sm:$0xff] }
 0x1fa   : > { %1018 = vst.msk [vmem:[#allocation3 + $0x48] sm:$0xff] %vm1014_vm0, %v1009_v0  ;;  %1459 = vst.msk [vmem:[#allocation3 + $0x50] sm:$0xff] %vm1014_vm0, %v1451_v39  ;;  %1767 = vmatprep.mubr.bf16.mxu1 %v1551_v42 }
 0x1fb   : > { %1768 = vmatmul.mubr.bf16.gmra.mrb[8].mxu1 %v1550_v43 }
 0x201   : > { %v1554_v47 = vld [vmem:[#allocation3 + $0x50] sm:$0xff]  ;;  %v1553_v48 = vld [vmem:[#allocation3 + $0x48] sm:$0xff] }
 0x202   : > { %1775 = vmatprep.mubr.bf16.mxu1 %v1554_v47 }
 0x203   : > { %1776 = vmatmul.mubr.bf16.gmra.mrb[12].mxu1 %v1553_v48 }
 0x204   : > { %2299 = vmatprep.mubr.msk.bf16.mxu1 %vm713_vm10, %v1552_v49 }
 0x20b   : > { %2300 = vmatmul.mubr.msk.bf16.vlgmr.msra.gmra.mrb[16].mxu1 %vm713_vm10, %v1555_v20  ;;  %v2181_v20 = vld [vmem:[%s3218_s6] ss:$0 sm:$0xff] }
 0x231   : > { %v2297_v46 = vpop.f32.mrb[8].mxu0 }
 0x232   : > { %v1818_v17 = vpop.f32.mrb[9].mxu0 }
 0x233   : > { %v2298_v26 = vpop.f32.mrb[10].mxu0 }
 0x234   : > { %v1821_v27 = vpop.f32.mrb[11].mxu0 }
 0x2b6   : > { %v2231_v50 = vpop.f32.mrb[0].mxu1 }
 0x2b7   : > { %v2232_v54 = vpop.f32.mrb[1].mxu1 }
 0x2b8   : > { %v2233_v55 = vadd.f32 %v2232_v54, %v2231_v50  ;;  %v2234_v56 = vpop.f32.mrb[2].mxu1 }
 0x2b9   : > { %v2235_v57 = vpop.f32.mrb[3].mxu1 }
 0x2ba   : > { %v1754_v21 = vadd.f32 %v2233_v55, %v2158_v52  ;;  %v2236_v31 = vadd.f32 %v2235_v57, %v2234_v56  ;;  %v2416_v55 = vld [vmem:[%s2680_s15] sm:$0xff] }
 0x2bc   : > { %v1819_v59 = vadd.f32 %v1818_v17, %v1754_v21  ;;  %v1757_v60 = vadd.f32 %v2236_v31, %v2158_v52  ;;  %v2417_v31 = vld [vmem:[%s2680_s15 + $0x18] sm:$0xff] }
 0x2be   : > { %v1822_v61 = vadd.f32 %v1821_v27, %v1757_v60  ;;  %v1849_v62 = vmax.f32 %v1819_v59, 0.0 }
 0x2c0   : > { %v1850_v63 = vmax.f32 %v1822_v61, 0.0  ;;  %v2418_v61 = vld [vmem:[%s2680_s15 + $0x8] sm:$0xff] }
 0x2c2   : > { %v1857_v1 = vpack.c.bf16 %v1850_v63, %v1849_v62 }
 0x2c3   : > { %v2237_v5 = vpop.f32.mrb[4].mxu1 }
 0x2c4   : > { %v2238_v6 = vpop.f32.mrb[5].mxu1  ;;  %2307 = vmatprep.mubr.msk.bf16.mxu0 %vm713_vm10, %v1857_v1 }
 0x2c5   : > { %v2239_v7 = vadd.f32 %v2238_v6, %v2237_v5  ;;  %v2240_v4 = vpop.f32.mrb[6].mxu1 }
 0x2c6   : > { %v2241_v44 = vpop.f32.mrb[7].mxu1 }
 0x2c7   : > { %v1762_v9 = vadd.f32 %v2239_v7, %v2158_v52  ;;  %v2242_v10 = vadd.f32 %v2241_v44, %v2240_v4 }
 0x2c9   : > { %v1827_v30 = vadd.f32 %v2297_v46, %v1762_v9  ;;  %v1765_v11 = vadd.f32 %v2242_v10, %v2158_v52  ;;  %v2419_v9 = vld [vmem:[%s2680_s15 + $0x30] sm:$0xff] }
 0x2cb   : > { %v1830_v58 = vadd.f32 %v2298_v26, %v1765_v11  ;;  %v1851_v2 = vmax.f32 %v1827_v30, 0.0 }
 0x2cd   : > { %v1852_v8 = vmax.f32 %v1830_v58, 0.0  ;;  %v2420_v58 = vld [vmem:[%s2680_s15 + $0x20] sm:$0xff] }
 0x2ce   : > { %v2243_v45 = vpop.f32.mrb[8].mxu1 }
 0x2cf   : > { %v1858_v3 = vpack.c.bf16 %v1852_v8, %v1851_v2  ;;  %v2244_v14 = vpop.f32.mrb[9].mxu1 }
 0x2d0   : > { %v2245_v15 = vadd.f32 %v2244_v14, %v2243_v45  ;;  %v2246_v16 = vpop.f32.mrb[10].mxu1  ;;  %v2421_v45 = vld [vmem:[%s2680_s15 + $0x38] sm:$0xff] }
 0x2d1   : > { %2308 = vmatmul.mubr.msk.bf16.vlgmr.msra.gmra.mrb[12].mxu0 %vm713_vm10, %v1858_v3  ;;  %v2247_v18 = vpop.f32.mrb[11].mxu1 }
 0x2d2   : > { %v2248_v23 = vadd.f32 %v2247_v18, %v2246_v16  ;;  %v1770_v32 = vadd.f32 %v2245_v15, %v2158_v52  ;;  %v2422_v16 = vld [vmem:[%s2680_s15 + $0x28] sm:$0xff]  ;;  %s2528_s15 = smov [#allocation7]  }
 0x2d3   : > { %s2457_s19 = sshll.u32 %s2528_s15, 4  ;;  %s2458_s19 = int_to_ptr.vmem [resolvable:$false] %s2457_s19 }
 0x2d4   : > { %v1773_v36 = vadd.f32 %v2248_v23, %v2158_v52  ;;  %s2459_s21 = scalar_lea.vmem %s2458_s19, 2048  ;;  %p2460_p8 = scmp.lt.s32.totalorder %s3159_s17, %s2458_s19 }
 0x2d5   : > { %p2461_p9 = scmp.lt.s32.totalorder %s2459_s21, %s2453_s23 }
 0x2d6   : > { %v2249_v24 = vpop.f32.mrb[12].mxu1 }
 0x2d7   : > { %v2250_v22 = vpop.f32.mrb[13].mxu1  ;;  %p2462_p13 = por %p2461_p9, %p2460_p8 }
 0x2d8   : > { %v2251_v19 = vadd.f32 %v2250_v22, %v2249_v24  ;;  %v2252_v25 = vpop.f32.mrb[14].mxu1 }
 0x2d9   : > { %v2253_v40 = vpop.f32.mrb[15].mxu1  ;;  %p2463_p1 = pnand %p2462_p13, %p2456_p12 }
 0x2da   : > { %v2254_v41 = vadd.f32 %v2253_v40, %v2252_v25  ;;  %v1778_v28 = vadd.f32 %v2251_v19, %v2158_v52 }
 0x2dc   : > { %v1781_v35 = vadd.f32 %v2254_v41, %v2158_v52 }
 0x2de   : > { %v2301_v29 = vpop.f32.mrb[16].mxu1 }
 0x2df   : > { %v1843_v33 = vadd.f32 %v2301_v29, %v1778_v28  ;;  %v1834_v34 = vpop.f32.mrb[17].mxu1 }
 0x2e0   : > { %v1835_v12 = vadd.f32 %v1834_v34, %v1770_v32  ;;  %v2302_v13 = vpop.f32.mrb[18].mxu1 }
 0x2e1   : > { %v1846_v37 = vadd.f32 %v2302_v13, %v1781_v35  ;;  %v1837_v38 = vpop.f32.mrb[19].mxu1  ;;  %v1855_v39 = vmax.f32 %v1843_v33, 0.0 }
 0x2e2   : > { %v1838_v0 = vadd.f32 %v1837_v38, %v1773_v36  ;;  %v1853_v43 = vmax.f32 %v1835_v12, 0.0 }
 0x2e3   : > { %v1856_v42 = vmax.f32 %v1846_v37, 0.0 }
 0x2e4   : > { %v1854_v47 = vmax.f32 %v1838_v0, 0.0 }
 0x2e5   : > { %v1860_v48 = vpack.c.bf16 %v1856_v42, %v1855_v39 }
 0x2e6   : > { %v1859_v49 = vpack.c.bf16 %v1854_v47, %v1853_v43 }
 0x2e8   : > { %2311 = vmatprep.mubr.msk.bf16.mxu0 %vm713_vm10, %v1859_v49 }
 0x2e9   : > { %2312 = vmatmul.mubr.msk.bf16.gmra.mrb[16].mxu0 %vm713_vm10, %v1860_v48 }
 0x3a4   : > { %v2309_v46 = vpop.f32.mrb[12].mxu0 }
 0x3a5   : > { %v1939_v17 = vadd.f32 %v2309_v46, %v2181_v20  ;;  %v1930_v26 = vpop.f32.mrb[13].mxu0 }
 0x3a6   : > { %v1931_v27 = vadd.f32 %v2181_v20, %v1930_v26  ;;  %v2310_v51 = vpop.f32.mrb[14].mxu0 }
 0x3a7   : > { %v1963_v50 = vadd.f32 %v2415_v53, %v1939_v17  ;;  %v1942_v52 = vadd.f32 %v2310_v51, %v2181_v20  ;;  %v1933_v54 = vpop.f32.mrb[15].mxu0 }
 0x3a8   : > { %v1961_v56 = vadd.f32 %v2416_v55, %v1931_v27  ;;  %v1934_v57 = vadd.f32 %v2181_v20, %v1933_v54 }
 0x3a9   : > { %v1971_v21 = vmax.f32 %v1963_v50, 0.0  ;;  %v1964_v59 = vadd.f32 %v2417_v31, %v1942_v52 }
 0x3aa   : > { %v1969_v60 = vmax.f32 %v1961_v56, 0.0  ;;  %v1962_v62 = vadd.f32 %v2418_v61, %v1934_v57 }
 0x3ab   : > { %1979 = vst [vmem:[%s3148_s20 + $0x10] sm:$0xff] %v1971_v21  ;;  %v1972_v63 = vmax.f32 %v1964_v59, 0.0 }
 0x3ac   : > { %1977 = vst [vmem:[%s3148_s20] sm:$0xff] %v1969_v60  ;;  %v1970_v1 = vmax.f32 %v1962_v62, 0.0 }
 0x3ad   : > { %1980 = vst [vmem:[%s3148_s20 + $0x18] sm:$0xff] %v1972_v63 }
 0x3ae   : > { %1978 = vst [vmem:[%s3148_s20 + $0x8] sm:$0xff] %v1970_v1 }
 0x3bc   : > { %v2313_v5 = vpop.f32.mrb[16].mxu0 }
 0x3bd   : > { %v1955_v6 = vadd.f32 %v2313_v5, %v2181_v20  ;;  %v1946_v7 = vpop.f32.mrb[17].mxu0 }
 0x3be   : > { %v1947_v4 = vadd.f32 %v2181_v20, %v1946_v7  ;;  %v2314_v44 = vpop.f32.mrb[18].mxu0 }
 0x3bf   : > { %v1967_v10 = vadd.f32 %v2419_v9, %v1955_v6  ;;  %v1958_v30 = vadd.f32 %v2314_v44, %v2181_v20  ;;  %v1949_v11 = vpop.f32.mrb[19].mxu0 }
 0x3c0   : > { %v1965_v2 = vadd.f32 %v2420_v58, %v1947_v4  ;;  %v1950_v8 = vadd.f32 %v2181_v20, %v1949_v11 }
 0x3c1   : > { %v1975_v3 = vmax.f32 %v1967_v10, 0.0  ;;  %v1968_v14 = vadd.f32 %v2421_v45, %v1958_v30 }
 0x3c2   : > { %v1973_v15 = vmax.f32 %v1965_v2, 0.0  ;;  %v1966_v18 = vadd.f32 %v2422_v16, %v1950_v8 }
 0x3c3   : > { %1983 = vst [vmem:[%s3148_s20 + $0x30] sm:$0xff] %v1975_v3  ;;  %v1976_v23 = vmax.f32 %v1968_v14, 0.0 }
 0x3c4   : > { %1981 = vst [vmem:[%s3148_s20 + $0x20] sm:$0xff] %v1973_v15  ;;  %v1974_v24 = vmax.f32 %v1966_v18, 0.0 }
 0x3c5   : > { %1984 = vst [vmem:[%s3148_s20 + $0x38] sm:$0xff] %v1976_v23 }
 0x3c6   : > { %1982 = vst [vmem:[%s3148_s20 + $0x28] sm:$0xff] %v1974_v24 }
 0x3c7   : > { %2466 = shalt.err (!%p2463_p1)
}
 0x3c8   : > { %s2467_s12 = scalar_lea.hbm %s3166_s22, 1024  ;;  %s2471_s20 = scalar_lea.hbm %s3219_s7, 8192 }
 0x3c9   : > { %p2468_p3 = scmp.ne.s32.totalorder %s3166_s22, %s2467_s12  ;;  %p2472_p0 = scmp.lt.u32.totalorder %s3166_s22, %s3219_s7 }
 0x3ca   : > { %p2473_p2 = scmp.lt.u32.totalorder %s2471_s20, %s2467_s12  ;;  %p2475_p6 = scmp.lt.u32.totalorder %s2467_s12, %s3166_s22 }
 0x3cb   : > { %p2469_p4 = pnand %p2468_p3, %p3236_p10 }
 0x3cc   : > { %p2474_p7 = por %p2473_p2, %p2472_p0 }
 0x3cd   : > { %p2470_p5 = pneg %p2469_p4 }
 0x3ce   : > { %p2476_p11 = por %p2475_p6, %p2474_p7 }
 0x3d0   : > { %p2477_p12 = pnand %p2476_p11, %p2470_p5 }
 0x3d2   : > { %2480 = shalt.err (!%p2477_p12)
}
 0x3d3   : > { %s2529_s18 = smov 128   ;;  %s2530_s23 = smov 8  }
 0x3d4   : > { %2321 = dma.vmem_to_hbm [thread:$0]  (%p3236_p10), %s3159_s17, 1024, %s3166_s22, %s1986_s28, %s2529_s18, %s2529_s18, %s2530_s23  }
 0x3d5 PF: > { %p2332_p8 = scmp.ge.s32.totalorder %s2519_s27, 2  ;;  %s2014_s15 = sand.u32 1, %s2507_s24  }
 0x3d6   : > { %p3237_p9 = scmp.ne.s32.totalorder %s3224_s14, 0  ;;  %s2015_s19 = scalar_lea.sflag [#allocation6], %s2014_s15 }
 0x3d8   : > { %p2328_p13 = pnand %p2332_p8, %p3237_p9 }
 0x3da   : > { %2502 = dma.done.wait (!%p2328_p13), %s2015_s19, 1024  }
 0x3db   : > { %2504 = vsyncadd (!%p2328_p13), %s2015_s19, 4294966272  ;;  %p20_p1 = scmp.ge.s32.totalorder %s2596_s30, 10   ;;  %s3238_s24 = smov %s2511_s25 }
 0x3dc   : > { %s3239_s25 = smov %s2515_s26  ;;  %s3240_s26 = smov %s2608_s10 }
 0x3dd   : > { %s3241_s27 = smov %s2596_s30  ;;  %22 = sbr.rel (!%p20_p1) target bundleno = 5 (0x5), region = 96 }
 0x3e4   :  { %2020 = vsyncpa [#allocation5], 1 }
 0x3e5   :  { %2022 = vsyncpa [#allocation5 + $0x1], 1 }
 0x3e6   :  { %2023 = vsyncpa [#allocation6], 1 }
 0x3e7   :  { %2025 = vsyncpa [#allocation6 + $0x1], 1 }

</bundles_post_ra>
